<compile_context>
chip_gen: v7x
topology: tpu7x:2x2x1
jax: 0.10.0
libtpu: 0.0.40
codegen_flags: <defaults>
</compile_context>

<pallas_src>
import functools

import jax
import jax.numpy as jnp
from jax.experimental import pallas as pl
from jax.experimental.pallas import tpu as pltpu

EPS = 1e-5


# ----------------------------------------------------------------------------
# Fused ResidualBlock kernel
# ----------------------------------------------------------------------------
@functools.lru_cache(maxsize=None)
def make_block_kernel(has_downsample, batch, length, eps=EPS):
    M = batch * length

    def geps_conv(x3d, codes2d, w_ref, p_ref, a_ref):
        """Circular, code-modulated conv (bias-free: bias cancels under training BN).

        x3d     : (B, L, Cin)   f32 channels-last
        codes2d : (M, r)        f32 per-sample code, broadcast over L
        w_ref   : (K*Cin, Cout) bf16  W0 with taps stacked into the contraction dim
        p_ref   : (K*Cin, r)    bf16  B  with taps stacked into the contraction dim
        a_ref   : (r, Cout)     f32   A^T (applied on the VPU)
        returns : (M, Cout)     f32
        """
        _, L, Cin = x3d.shape
        KC, Cout = w_ref.shape
        K = KC // Cin
        r = p_ref.shape[-1]
        pad = (K - 1) // 2

        # Stack the K circular shifts along the channel (lane) axis so the whole conv
        # is a single MXU matmul; reshape to 2-D and cast to bf16 once per conv.
        if K == 1:
            slab = x3d.reshape(M, Cin).astype(jnp.bfloat16)
        else:
            parts = []
            for t in range(K):                      # static; out[l] uses x[(l+t-pad)%L]
                s = (pad - t) % L
                parts.append(x3d if s == 0 else pltpu.roll(x3d, s, axis=1))
            slab = (jnp.concatenate(parts, axis=-1)     # (B, L, K*Cin)
                    .reshape(M, KC)
                    .astype(jnp.bfloat16))

        acc = jnp.dot(slab, w_ref[...], preferred_element_type=jnp.float32)  # (M, Cout)
        z = jnp.dot(slab, p_ref[...], preferred_element_type=jnp.float32)    # (M, r)

        # Low-rank path: code scale + rank-r A^T contraction as r broadcast mul-adds
        # on the f32 tile (r ~ 4 would waste the MXU and cost an extra bf16 round-trip).
        zc = z * codes2d                                 # (M, r)   VPU
        a = a_ref[...]                                   # (r, Cout)
        for q in range(r):                               # static unroll
            acc = acc + zc[:, q:q + 1] * a[q:q + 1, :]
        return acc

    def batchnorm(y, g_ref, b_ref):
        """Training-mode BatchNorm1d over (N, L), folded to per-channel scale/shift."""
        m = jnp.mean(y, axis=0, keepdims=True)
        var = jnp.maximum(jnp.mean(y * y, axis=0, keepdims=True) - m * m, 0.0)
        scale = g_ref[...] * jax.lax.rsqrt(var + eps)
        shift = b_ref[...] - m * scale
        return y * scale + shift                         # 2 full-tile VPU ops

    def kernel(*refs):
        it = iter(refs)
        x_ref = next(it)                                 # (B, L, Cin)  f32
        codes_ref = next(it)                             # (M, r)       f32
        c1 = tuple(next(it) for _ in range(5))           # conv1 + bn1
        c2 = tuple(next(it) for _ in range(5))           # conv2 + bn2
        cd = tuple(next(it) for _ in range(5)) if has_downsample else None
        o_ref = next(it)                                 # (M, Cout)    f32 lane-dense

        x = x_ref[...]
        codes2d = codes_ref[...]

        def conv_bn(inp3d, c):
            w_ref, p_ref, a_ref, g_ref, b_ref = c
            return batchnorm(geps_conv(inp3d, codes2d, w_ref, p_ref, a_ref),
                             g_ref, b_ref)

        h = jnp.maximum(conv_bn(x, c1), 0.0)             # conv1 -> bn1 -> relu
        cout = h.shape[-1]
        h = conv_bn(h.reshape(batch, length, cout), c2)  # conv2 -> bn2
        res = conv_bn(x, cd) if has_downsample else x.reshape(M, cout)
        o_ref[...] = jnp.maximum(h + res, 0.0)           # out += residual ; relu

    return kernel


# ----------------------------------------------------------------------------
# One-time parameter prep (hoisted out of the per-step forward path)
# ----------------------------------------------------------------------------
def _prep_conv(cp):
    """Torch-layout GEPSConv1D params -> stacked, pre-transposed kernel operands.

    The conv bias is intentionally dropped: a per-channel bias is exactly cancelled by
    the training-mode BatchNorm that follows every conv in this block.
    """
    W0, A, Bp = cp['W0'], cp['A'], cp['B']        # (Cout,Cin,K), (Cout,r), (r,Cin,K)
    Cout, Cin, K = W0.shape
    r = A.shape[1]
    w_stk = jnp.transpose(W0, (2, 1, 0)).reshape(K * Cin, Cout).astype(jnp.bfloat16)
    p_stk = jnp.transpose(Bp, (2, 1, 0)).reshape(K * Cin, r).astype(jnp.bfloat16)
    a_t = jnp.transpose(A, (1, 0)).astype(jnp.float32)   # (r, Cout), f32 (VPU path)
    return (w_stk, p_stk, a_t)


def _prep_bn(bn):
    gamma, beta = bn
    return (gamma.reshape(1, -1).astype(jnp.float32),
            beta.reshape(1, -1).astype(jnp.float32))


def prepare_block(params):
    """Call once at init; returns everything residual_block_forward needs."""
    weights = [*_prep_conv(params['conv1']), *_prep_bn(params['bn1']),
               *_prep_conv(params['conv2']), *_prep_bn(params['bn2'])]
    has_ds = params.get('downsample') is not None
    if has_ds:
        weights += [*_prep_conv(params['downsample']['conv']),
                    *_prep_bn(params['downsample']['bn'])]
    return dict(weights=tuple(jax.device_put(w) for w in weights),
                has_downsample=has_ds,
                cout=int(params['conv1']['W0'].shape[0]))


# ----------------------------------------------------------------------------
# Forward wrapper: channels-last in, channels-last out (no per-block transposes)
# ----------------------------------------------------------------------------
def residual_block_forward(x_nlc, codes, prepped):
    """x_nlc: (B, L, Cin) f32 channels-last; codes: (B, r) per-sample code vectors."""
    B, L, Cin = x_nlc.shape
    r = codes.shape[-1]
    cout = prepped['cout']
    has_ds = prepped['has_downsample']
    if not has_ds:
        assert Cin == cout, "identity skip needs matching channel counts"

    codes2d = jnp.broadcast_to(codes.astype(jnp.float32)[:, None, :],
                               (B, L, r)).reshape(B * L, r)

    inputs = (x_nlc.astype(jnp.float32), codes2d, *prepped['weights'])
    # Single fused call: all intermediates stay in VMEM.  At these sizes no grid is
    # needed (training-mode BN statistics also want the full (B, L) extent).
    out2d = pl.pallas_call(
        make_block_kernel(has_ds, B, L),
        out_shape=jax.ShapeDtypeStruct((B * L, cout), jnp.float32),
        in_specs=[pl.BlockSpec(memory_space=pltpu.MemorySpace.VMEM)] * len(inputs),
        out_specs=pl.BlockSpec(memory_space=pltpu.MemorySpace.VMEM),
    )(*inputs)
    return out2d.reshape(B, L, cout)


# ----------------------------------------------------------------------------
# Pure-JAX f32 reference (for tolerance testing against the kernel)
# ----------------------------------------------------------------------------
def reference_block_forward(x_nlc, codes, params, eps=EPS):
    def conv(inp, cp):
        W0, A, Bp, bias = cp['W0'], cp['A'], cp['B'], cp['bias']
        Cout, Cin, K = W0.shape
        pad = (K - 1) // 2
        W = W0[None] + jnp.einsum('oq,bq,qik->boik', A, codes, Bp)  # per-sample weight
        Bn, L, _ = inp.shape
        out = jnp.zeros((Bn, L, Cout), jnp.float32)
        for t in range(K):
            xs = jnp.roll(inp, (pad - t) % L, axis=1)
            out = out + jnp.einsum('bli,boi->blo', xs, W[..., t])
        return out + bias[None, None, :]

    def bn(y, g_b):
        g, b = g_b
        m = jnp.mean(y, axis=(0, 1), keepdims=True)
        v = jnp.var(y, axis=(0, 1), keepdims=True)
        return (y - m) * jax.lax.rsqrt(v + eps) * g + b

    h = jax.nn.relu(bn(conv(x_nlc, params['conv1']), params['bn1']))
    h = bn(conv(h, params['conv2']), params['bn2'])
    if params.get('downsample') is not None:
        res = bn(conv(x_nlc, params['downsample']['conv']), params['downsample']['bn'])
    else:
        res = x_nlc
    return jax.nn.relu(h + res)


# ----------------------------------------------------------------------------
# Deterministic synthetic parameters (no checkpoint)
# ----------------------------------------------------------------------------
def init_conv(key, cin, cout, k, r):
    k1, k2, k3, k4 = jax.random.split(key, 4)
    return dict(
        W0=jax.random.normal(k1, (cout, cin, k), jnp.float32) * (cin * k) ** -0.5,
        bias=jax.random.normal(k2, (cout,), jnp.float32) * 0.01,   # cancelled by BN
        A=jax.random.normal(k3, (cout, r), jnp.float32) * 0.1,
        B=jax.random.normal(k4, (r, cin, k), jnp.float32) * 0.1,
    )


def init_bn(key, c):
    k1, k2 = jax.random.split(key)
    return (1.0 + 0.1 * jax.random.normal(k1, (c,), jnp.float32),
            0.1 * jax.random.normal(k2, (c,), jnp.float32))


def init_block(key, cin, cout, r):
    keys = jax.random.split(key, 6)
    blk = dict(
        conv1=init_conv(keys[0], cin, cout, 3, r),
        bn1=init_bn(keys[1], cout),
        conv2=init_conv(keys[2], cout, cout, 3, r),
        bn2=init_bn(keys[3], cout),
        downsample=None,
    )
    if cin != cout:
        blk['downsample'] = dict(conv=init_conv(keys[4], cin, cout, 1, r),
                                 bn=init_bn(keys[5], cout))
    return blk


if __name__ == "__main__":
    key = jax.random.PRNGKey(0)
    kb1, kb2, kx, kc = jax.random.split(key, 4)

    B, L, Cin, Cout, r = 2, 16, 64, 128, 4

    blk1 = init_block(kb1, Cin, Cout, r)      # channel change -> downsample skip path
    blk2 = init_block(kb2, Cout, Cout, r)     # identity skip path
    prep1 = prepare_block(blk1)               # one-time weight prep (hoisted from fwd)
    prep2 = prepare_block(blk2)

    x_ncl = jax.random.normal(kx, (B, Cin, L), jnp.float32)   # PyTorch NCL layout
    codes = 0.5 * jax.random.normal(kc, (B, r), jnp.float32)

    x = jnp.transpose(x_ncl, (0, 2, 1))       # NCL -> channels-last once, at model entry
    y = residual_block_forward(x, codes, prep1)
    y = residual_block_forward(y, codes, prep2)
    y = jax.block_until_ready(y)

    assert y.shape == (B, L, Cout) and y.dtype == jnp.float32
    assert bool(jnp.all(jnp.isfinite(y)))

    # Tolerance check vs the pure-f32 reference (bf16 MXU operands -> small diffs).
    y_ref = reference_block_forward(
        reference_block_forward(x, codes, blk1), codes, blk2)
    max_err = float(jnp.max(jnp.abs(y - y_ref)))
    assert max_err < 0.2, f"max abs error vs f32 reference: {max_err}"

    print("KERNEL_OK")
</pallas_src>

<mosaic_0001>
module attributes {stable_mosaic.version = 11 : i64} {
  func.func @kernel(%arg0: memref<2x16x64xf32, #tpu.memory_space<vmem>>, %arg1: memref<32x4xf32, #tpu.memory_space<vmem>>, %arg2: memref<192x128xbf16, #tpu.memory_space<vmem>>, %arg3: memref<192x4xbf16, #tpu.memory_space<vmem>>, %arg4: memref<4x128xf32, #tpu.memory_space<vmem>>, %arg5: memref<1x128xf32, #tpu.memory_space<vmem>>, %arg6: memref<1x128xf32, #tpu.memory_space<vmem>>, %arg7: memref<384x128xbf16, #tpu.memory_space<vmem>>, %arg8: memref<384x4xbf16, #tpu.memory_space<vmem>>, %arg9: memref<4x128xf32, #tpu.memory_space<vmem>>, %arg10: memref<1x128xf32, #tpu.memory_space<vmem>>, %arg11: memref<1x128xf32, #tpu.memory_space<vmem>>, %arg12: memref<64x128xbf16, #tpu.memory_space<vmem>>, %arg13: memref<64x4xbf16, #tpu.memory_space<vmem>>, %arg14: memref<4x128xf32, #tpu.memory_space<vmem>>, %arg15: memref<1x128xf32, #tpu.memory_space<vmem>>, %arg16: memref<1x128xf32, #tpu.memory_space<vmem>>, %arg17: memref<32x128xf32, #tpu.memory_space<vmem>>) attributes {dimension_semantics = [], scalar_prefetch = 0 : i64, scratch_operands = 0 : i64, tpu.core_type = #tpu.core_type<tc>} {
    %c0 = arith.constant 0 : index
    %c0_0 = arith.constant 0 : index
    %c0_1 = arith.constant 0 : index
    %0 = vector.load %arg0[%c0, %c0_0, %c0_1] : memref<2x16x64xf32, #tpu.memory_space<vmem>>, vector<2x16x64xf32>
    %c0_2 = arith.constant 0 : index
    %c0_3 = arith.constant 0 : index
    %1 = vector.load %arg1[%c0_2, %c0_3] : memref<32x4xf32, #tpu.memory_space<vmem>>, vector<32x4xf32>
    %c1_i32 = arith.constant 1 : i32
    %2 = tpu.dynamic_rotate %0 by %c1_i32 dim 1 : vector<2x16x64xf32>, i32 -> vector<2x16x64xf32>
    %c15_i32 = arith.constant 15 : i32
    %3 = tpu.dynamic_rotate %0 by %c15_i32 dim 1 : vector<2x16x64xf32>, i32 -> vector<2x16x64xf32>
    %4 = tpu.concatenate %2, %0, %3 in 2 : vector<2x16x64xf32>, vector<2x16x64xf32>, vector<2x16x64xf32> -> vector<2x16x192xf32>
    %5 = vector.shape_cast %4 : vector<2x16x192xf32> to vector<32x192xf32>
    %6 = arith.truncf %5 : vector<32x192xf32> to vector<32x192xbf16>
    %c0_4 = arith.constant 0 : index
    %c0_5 = arith.constant 0 : index
    %7 = vector.load %arg2[%c0_4, %c0_5] : memref<192x128xbf16, #tpu.memory_space<vmem>>, vector<192x128xbf16>
    %cst = arith.constant dense<0.000000e+00> : vector<32x128xf32>
    %8 = tpu.matmul %6, %7, %cst {dimension_numbers = #tpu.dot_dimension_numbers<[1], [0], [0], [1], [0, 0, 1, 1], [], []>} : vector<32x192xbf16>, vector<192x128xbf16>, vector<32x128xf32> -> vector<32x128xf32>
    %c0_6 = arith.constant 0 : index
    %c0_7 = arith.constant 0 : index
    %9 = vector.load %arg3[%c0_6, %c0_7] : memref<192x4xbf16, #tpu.memory_space<vmem>>, vector<192x4xbf16>
    %cst_8 = arith.constant dense<0.000000e+00> : vector<32x4xf32>
    %10 = tpu.matmul %6, %9, %cst_8 {dimension_numbers = #tpu.dot_dimension_numbers<[1], [0], [0], [1], [0, 0, 1, 1], [], []>} : vector<32x192xbf16>, vector<192x4xbf16>, vector<32x4xf32> -> vector<32x4xf32>
    %11 = arith.mulf %10, %1 : vector<32x4xf32>
    %c0_9 = arith.constant 0 : index
    %c0_10 = arith.constant 0 : index
    %12 = vector.load %arg4[%c0_9, %c0_10] : memref<4x128xf32, #tpu.memory_space<vmem>>, vector<4x128xf32>
    %13 = vector.extract_strided_slice %11 {offsets = [0, 0], sizes = [32, 1], strides = [1, 1]} : vector<32x4xf32> to vector<32x1xf32>
    %14 = vector.extract_strided_slice %12 {offsets = [0, 0], sizes = [1, 128], strides = [1, 1]} : vector<4x128xf32> to vector<1x128xf32>
    %15 = vector.broadcast %13 : vector<32x1xf32> to vector<32x128xf32>
    %16 = vector.broadcast %14 : vector<1x128xf32> to vector<32x128xf32>
    %17 = arith.mulf %15, %16 : vector<32x128xf32>
    %18 = arith.addf %8, %17 : vector<32x128xf32>
    %19 = vector.extract_strided_slice %11 {offsets = [0, 1], sizes = [32, 1], strides = [1, 1]} : vector<32x4xf32> to vector<32x1xf32>
    %20 = vector.extract_strided_slice %12 {offsets = [1, 0], sizes = [1, 128], strides = [1, 1]} : vector<4x128xf32> to vector<1x128xf32>
    %21 = vector.broadcast %19 : vector<32x1xf32> to vector<32x128xf32>
    %22 = vector.broadcast %20 : vector<1x128xf32> to vector<32x128xf32>
    %23 = arith.mulf %21, %22 : vector<32x128xf32>
    %24 = arith.addf %18, %23 : vector<32x128xf32>
    %25 = vector.extract_strided_slice %11 {offsets = [0, 2], sizes = [32, 1], strides = [1, 1]} : vector<32x4xf32> to vector<32x1xf32>
    %26 = vector.extract_strided_slice %12 {offsets = [2, 0], sizes = [1, 128], strides = [1, 1]} : vector<4x128xf32> to vector<1x128xf32>
    %27 = vector.broadcast %25 : vector<32x1xf32> to vector<32x128xf32>
    %28 = vector.broadcast %26 : vector<1x128xf32> to vector<32x128xf32>
    %29 = arith.mulf %27, %28 : vector<32x128xf32>
    %30 = arith.addf %24, %29 : vector<32x128xf32>
    %31 = vector.extract_strided_slice %11 {offsets = [0, 3], sizes = [32, 1], strides = [1, 1]} : vector<32x4xf32> to vector<32x1xf32>
    %32 = vector.extract_strided_slice %12 {offsets = [3, 0], sizes = [1, 128], strides = [1, 1]} : vector<4x128xf32> to vector<1x128xf32>
    %33 = vector.broadcast %31 : vector<32x1xf32> to vector<32x128xf32>
    %34 = vector.broadcast %32 : vector<1x128xf32> to vector<32x128xf32>
    %35 = arith.mulf %33, %34 : vector<32x128xf32>
    %36 = arith.addf %30, %35 : vector<32x128xf32>
    %cst_11 = arith.constant dense<0.000000e+00> : vector<128xf32>
    %37 = vector.multi_reduction <add>, %36, %cst_11 [0] : vector<32x128xf32> to vector<128xf32>
    %38 = vector.shape_cast %37 : vector<128xf32> to vector<1x128xf32>
    %cst_12 = arith.constant 3.200000e+01 : f32
    %39 = vector.broadcast %cst_12 : f32 to vector<1x128xf32>
    %40 = arith.divf %38, %39 : vector<1x128xf32>
    %41 = arith.mulf %36, %36 : vector<32x128xf32>
    %cst_13 = arith.constant dense<0.000000e+00> : vector<128xf32>
    %42 = vector.multi_reduction <add>, %41, %cst_13 [0] : vector<32x128xf32> to vector<128xf32>
    %43 = vector.shape_cast %42 : vector<128xf32> to vector<1x128xf32>
    %cst_14 = arith.constant 3.200000e+01 : f32
    %44 = vector.broadcast %cst_14 : f32 to vector<1x128xf32>
    %45 = arith.divf %43, %44 : vector<1x128xf32>
    %46 = arith.mulf %40, %40 : vector<1x128xf32>
    %47 = arith.subf %45, %46 : vector<1x128xf32>
    %cst_15 = arith.constant 0.000000e+00 : f32
    %48 = vector.broadcast %cst_15 : f32 to vector<1x128xf32>
    %49 = arith.maximumf %47, %48 : vector<1x128xf32>
    %c0_16 = arith.constant 0 : index
    %c0_17 = arith.constant 0 : index
    %50 = vector.load %arg5[%c0_16, %c0_17] : memref<1x128xf32, #tpu.memory_space<vmem>>, vector<1x128xf32>
    %cst_18 = arith.constant 9.99999974E-6 : f32
    %51 = vector.broadcast %cst_18 : f32 to vector<1x128xf32>
    %52 = arith.addf %49, %51 : vector<1x128xf32>
    %53 = math.rsqrt %52 : vector<1x128xf32>
    %54 = arith.mulf %50, %53 : vector<1x128xf32>
    %c0_19 = arith.constant 0 : index
    %c0_20 = arith.constant 0 : index
    %55 = vector.load %arg6[%c0_19, %c0_20] : memref<1x128xf32, #tpu.memory_space<vmem>>, vector<1x128xf32>
    %56 = arith.mulf %40, %54 : vector<1x128xf32>
    %57 = arith.subf %55, %56 : vector<1x128xf32>
    %58 = vector.broadcast %54 : vector<1x128xf32> to vector<32x128xf32>
    %59 = arith.mulf %36, %58 : vector<32x128xf32>
    %60 = vector.broadcast %57 : vector<1x128xf32> to vector<32x128xf32>
    %61 = arith.addf %59, %60 : vector<32x128xf32>
    %cst_21 = arith.constant 0.000000e+00 : f32
    %62 = vector.broadcast %cst_21 : f32 to vector<32x128xf32>
    %63 = arith.maximumf %61, %62 : vector<32x128xf32>
    %64 = vector.shape_cast %63 : vector<32x128xf32> to vector<2x16x128xf32>
    %c1_i32_22 = arith.constant 1 : i32
    %65 = tpu.dynamic_rotate %64 by %c1_i32_22 dim 1 : vector<2x16x128xf32>, i32 -> vector<2x16x128xf32>
    %c15_i32_23 = arith.constant 15 : i32
    %66 = tpu.dynamic_rotate %64 by %c15_i32_23 dim 1 : vector<2x16x128xf32>, i32 -> vector<2x16x128xf32>
    %67 = tpu.concatenate %65, %64, %66 in 2 : vector<2x16x128xf32>, vector<2x16x128xf32>, vector<2x16x128xf32> -> vector<2x16x384xf32>
    %68 = vector.shape_cast %67 : vector<2x16x384xf32> to vector<32x384xf32>
    %69 = arith.truncf %68 : vector<32x384xf32> to vector<32x384xbf16>
    %c0_24 = arith.constant 0 : index
    %c0_25 = arith.constant 0 : index
    %70 = vector.load %arg7[%c0_24, %c0_25] : memref<384x128xbf16, #tpu.memory_space<vmem>>, vector<384x128xbf16>
    %cst_26 = arith.constant dense<0.000000e+00> : vector<32x128xf32>
    %71 = tpu.matmul %69, %70, %cst_26 {dimension_numbers = #tpu.dot_dimension_numbers<[1], [0], [0], [1], [0, 0, 1, 1], [], []>} : vector<32x384xbf16>, vector<384x128xbf16>, vector<32x128xf32> -> vector<32x128xf32>
    %c0_27 = arith.constant 0 : index
    %c0_28 = arith.constant 0 : index
    %72 = vector.load %arg8[%c0_27, %c0_28] : memref<384x4xbf16, #tpu.memory_space<vmem>>, vector<384x4xbf16>
    %cst_29 = arith.constant dense<0.000000e+00> : vector<32x4xf32>
    %73 = tpu.matmul %69, %72, %cst_29 {dimension_numbers = #tpu.dot_dimension_numbers<[1], [0], [0], [1], [0, 0, 1, 1], [], []>} : vector<32x384xbf16>, vector<384x4xbf16>, vector<32x4xf32> -> vector<32x4xf32>
    %74 = arith.mulf %73, %1 : vector<32x4xf32>
    %c0_30 = arith.constant 0 : index
    %c0_31 = arith.constant 0 : index
    %75 = vector.load %arg9[%c0_30, %c0_31] : memref<4x128xf32, #tpu.memory_space<vmem>>, vector<4x128xf32>
    %76 = vector.extract_strided_slice %74 {offsets = [0, 0], sizes = [32, 1], strides = [1, 1]} : vector<32x4xf32> to vector<32x1xf32>
    %77 = vector.extract_strided_slice %75 {offsets = [0, 0], sizes = [1, 128], strides = [1, 1]} : vector<4x128xf32> to vector<1x128xf32>
    %78 = vector.broadcast %76 : vector<32x1xf32> to vector<32x128xf32>
    %79 = vector.broadcast %77 : vector<1x128xf32> to vector<32x128xf32>
    %80 = arith.mulf %78, %79 : vector<32x128xf32>
    %81 = arith.addf %71, %80 : vector<32x128xf32>
    %82 = vector.extract_strided_slice %74 {offsets = [0, 1], sizes = [32, 1], strides = [1, 1]} : vector<32x4xf32> to vector<32x1xf32>
    %83 = vector.extract_strided_slice %75 {offsets = [1, 0], sizes = [1, 128], strides = [1, 1]} : vector<4x128xf32> to vector<1x128xf32>
    %84 = vector.broadcast %82 : vector<32x1xf32> to vector<32x128xf32>
    %85 = vector.broadcast %83 : vector<1x128xf32> to vector<32x128xf32>
    %86 = arith.mulf %84, %85 : vector<32x128xf32>
    %87 = arith.addf %81, %86 : vector<32x128xf32>
    %88 = vector.extract_strided_slice %74 {offsets = [0, 2], sizes = [32, 1], strides = [1, 1]} : vector<32x4xf32> to vector<32x1xf32>
    %89 = vector.extract_strided_slice %75 {offsets = [2, 0], sizes = [1, 128], strides = [1, 1]} : vector<4x128xf32> to vector<1x128xf32>
    %90 = vector.broadcast %88 : vector<32x1xf32> to vector<32x128xf32>
    %91 = vector.broadcast %89 : vector<1x128xf32> to vector<32x128xf32>
    %92 = arith.mulf %90, %91 : vector<32x128xf32>
    %93 = arith.addf %87, %92 : vector<32x128xf32>
    %94 = vector.extract_strided_slice %74 {offsets = [0, 3], sizes = [32, 1], strides = [1, 1]} : vector<32x4xf32> to vector<32x1xf32>
    %95 = vector.extract_strided_slice %75 {offsets = [3, 0], sizes = [1, 128], strides = [1, 1]} : vector<4x128xf32> to vector<1x128xf32>
    %96 = vector.broadcast %94 : vector<32x1xf32> to vector<32x128xf32>
    %97 = vector.broadcast %95 : vector<1x128xf32> to vector<32x128xf32>
    %98 = arith.mulf %96, %97 : vector<32x128xf32>
    %99 = arith.addf %93, %98 : vector<32x128xf32>
    %cst_32 = arith.constant dense<0.000000e+00> : vector<128xf32>
    %100 = vector.multi_reduction <add>, %99, %cst_32 [0] : vector<32x128xf32> to vector<128xf32>
    %101 = vector.shape_cast %100 : vector<128xf32> to vector<1x128xf32>
    %cst_33 = arith.constant 3.200000e+01 : f32
    %102 = vector.broadcast %cst_33 : f32 to vector<1x128xf32>
    %103 = arith.divf %101, %102 : vector<1x128xf32>
    %104 = arith.mulf %99, %99 : vector<32x128xf32>
    %cst_34 = arith.constant dense<0.000000e+00> : vector<128xf32>
    %105 = vector.multi_reduction <add>, %104, %cst_34 [0] : vector<32x128xf32> to vector<128xf32>
    %106 = vector.shape_cast %105 : vector<128xf32> to vector<1x128xf32>
    %cst_35 = arith.constant 3.200000e+01 : f32
    %107 = vector.broadcast %cst_35 : f32 to vector<1x128xf32>
    %108 = arith.divf %106, %107 : vector<1x128xf32>
    %109 = arith.mulf %103, %103 : vector<1x128xf32>
    %110 = arith.subf %108, %109 : vector<1x128xf32>
    %cst_36 = arith.constant 0.000000e+00 : f32
    %111 = vector.broadcast %cst_36 : f32 to vector<1x128xf32>
    %112 = arith.maximumf %110, %111 : vector<1x128xf32>
    %c0_37 = arith.constant 0 : index
    %c0_38 = arith.constant 0 : index
    %113 = vector.load %arg10[%c0_37, %c0_38] : memref<1x128xf32, #tpu.memory_space<vmem>>, vector<1x128xf32>
    %cst_39 = arith.constant 9.99999974E-6 : f32
    %114 = vector.broadcast %cst_39 : f32 to vector<1x128xf32>
    %115 = arith.addf %112, %114 : vector<1x128xf32>
    %116 = math.rsqrt %115 : vector<1x128xf32>
    %117 = arith.mulf %113, %116 : vector<1x128xf32>
    %c0_40 = arith.constant 0 : index
    %c0_41 = arith.constant 0 : index
    %118 = vector.load %arg11[%c0_40, %c0_41] : memref<1x128xf32, #tpu.memory_space<vmem>>, vector<1x128xf32>
    %119 = arith.mulf %103, %117 : vector<1x128xf32>
    %120 = arith.subf %118, %119 : vector<1x128xf32>
    %121 = vector.broadcast %117 : vector<1x128xf32> to vector<32x128xf32>
    %122 = arith.mulf %99, %121 : vector<32x128xf32>
    %123 = vector.broadcast %120 : vector<1x128xf32> to vector<32x128xf32>
    %124 = arith.addf %122, %123 : vector<32x128xf32>
    %125 = vector.shape_cast %0 : vector<2x16x64xf32> to vector<32x64xf32>
    %126 = arith.truncf %125 : vector<32x64xf32> to vector<32x64xbf16>
    %c0_42 = arith.constant 0 : index
    %c0_43 = arith.constant 0 : index
    %127 = vector.load %arg12[%c0_42, %c0_43] : memref<64x128xbf16, #tpu.memory_space<vmem>>, vector<64x128xbf16>
    %cst_44 = arith.constant dense<0.000000e+00> : vector<32x128xf32>
    %128 = tpu.matmul %126, %127, %cst_44 {dimension_numbers = #tpu.dot_dimension_numbers<[1], [0], [0], [1], [0, 0, 1, 1], [], []>} : vector<32x64xbf16>, vector<64x128xbf16>, vector<32x128xf32> -> vector<32x128xf32>
    %c0_45 = arith.constant 0 : index
    %c0_46 = arith.constant 0 : index
    %129 = vector.load %arg13[%c0_45, %c0_46] : memref<64x4xbf16, #tpu.memory_space<vmem>>, vector<64x4xbf16>
    %cst_47 = arith.constant dense<0.000000e+00> : vector<32x4xf32>
    %130 = tpu.matmul %126, %129, %cst_47 {dimension_numbers = #tpu.dot_dimension_numbers<[1], [0], [0], [1], [0, 0, 1, 1], [], []>} : vector<32x64xbf16>, vector<64x4xbf16>, vector<32x4xf32> -> vector<32x4xf32>
    %131 = arith.mulf %130, %1 : vector<32x4xf32>
    %c0_48 = arith.constant 0 : index
    %c0_49 = arith.constant 0 : index
    %132 = vector.load %arg14[%c0_48, %c0_49] : memref<4x128xf32, #tpu.memory_space<vmem>>, vector<4x128xf32>
    %133 = vector.extract_strided_slice %131 {offsets = [0, 0], sizes = [32, 1], strides = [1, 1]} : vector<32x4xf32> to vector<32x1xf32>
    %134 = vector.extract_strided_slice %132 {offsets = [0, 0], sizes = [1, 128], strides = [1, 1]} : vector<4x128xf32> to vector<1x128xf32>
    %135 = vector.broadcast %133 : vector<32x1xf32> to vector<32x128xf32>
    %136 = vector.broadcast %134 : vector<1x128xf32> to vector<32x128xf32>
    %137 = arith.mulf %135, %136 : vector<32x128xf32>
    %138 = arith.addf %128, %137 : vector<32x128xf32>
    %139 = vector.extract_strided_slice %131 {offsets = [0, 1], sizes = [32, 1], strides = [1, 1]} : vector<32x4xf32> to vector<32x1xf32>
    %140 = vector.extract_strided_slice %132 {offsets = [1, 0], sizes = [1, 128], strides = [1, 1]} : vector<4x128xf32> to vector<1x128xf32>
    %141 = vector.broadcast %139 : vector<32x1xf32> to vector<32x128xf32>
    %142 = vector.broadcast %140 : vector<1x128xf32> to vector<32x128xf32>
    %143 = arith.mulf %141, %142 : vector<32x128xf32>
    %144 = arith.addf %138, %143 : vector<32x128xf32>
    %145 = vector.extract_strided_slice %131 {offsets = [0, 2], sizes = [32, 1], strides = [1, 1]} : vector<32x4xf32> to vector<32x1xf32>
    %146 = vector.extract_strided_slice %132 {offsets = [2, 0], sizes = [1, 128], strides = [1, 1]} : vector<4x128xf32> to vector<1x128xf32>
    %147 = vector.broadcast %145 : vector<32x1xf32> to vector<32x128xf32>
    %148 = vector.broadcast %146 : vector<1x128xf32> to vector<32x128xf32>
    %149 = arith.mulf %147, %148 : vector<32x128xf32>
    %150 = arith.addf %144, %149 : vector<32x128xf32>
    %151 = vector.extract_strided_slice %131 {offsets = [0, 3], sizes = [32, 1], strides = [1, 1]} : vector<32x4xf32> to vector<32x1xf32>
    %152 = vector.extract_strided_slice %132 {offsets = [3, 0], sizes = [1, 128], strides = [1, 1]} : vector<4x128xf32> to vector<1x128xf32>
    %153 = vector.broadcast %151 : vector<32x1xf32> to vector<32x128xf32>
    %154 = vector.broadcast %152 : vector<1x128xf32> to vector<32x128xf32>
    %155 = arith.mulf %153, %154 : vector<32x128xf32>
    %156 = arith.addf %150, %155 : vector<32x128xf32>
    %cst_50 = arith.constant dense<0.000000e+00> : vector<128xf32>
    %157 = vector.multi_reduction <add>, %156, %cst_50 [0] : vector<32x128xf32> to vector<128xf32>
    %158 = vector.shape_cast %157 : vector<128xf32> to vector<1x128xf32>
    %cst_51 = arith.constant 3.200000e+01 : f32
    %159 = vector.broadcast %cst_51 : f32 to vector<1x128xf32>
    %160 = arith.divf %158, %159 : vector<1x128xf32>
    %161 = arith.mulf %156, %156 : vector<32x128xf32>
    %cst_52 = arith.constant dense<0.000000e+00> : vector<128xf32>
    %162 = vector.multi_reduction <add>, %161, %cst_52 [0] : vector<32x128xf32> to vector<128xf32>
    %163 = vector.shape_cast %162 : vector<128xf32> to vector<1x128xf32>
    %cst_53 = arith.constant 3.200000e+01 : f32
    %164 = vector.broadcast %cst_53 : f32 to vector<1x128xf32>
    %165 = arith.divf %163, %164 : vector<1x128xf32>
    %166 = arith.mulf %160, %160 : vector<1x128xf32>
    %167 = arith.subf %165, %166 : vector<1x128xf32>
    %cst_54 = arith.constant 0.000000e+00 : f32
    %168 = vector.broadcast %cst_54 : f32 to vector<1x128xf32>
    %169 = arith.maximumf %167, %168 : vector<1x128xf32>
    %c0_55 = arith.constant 0 : index
    %c0_56 = arith.constant 0 : index
    %170 = vector.load %arg15[%c0_55, %c0_56] : memref<1x128xf32, #tpu.memory_space<vmem>>, vector<1x128xf32>
    %cst_57 = arith.constant 9.99999974E-6 : f32
    %171 = vector.broadcast %cst_57 : f32 to vector<1x128xf32>
    %172 = arith.addf %169, %171 : vector<1x128xf32>
    %173 = math.rsqrt %172 : vector<1x128xf32>
    %174 = arith.mulf %170, %173 : vector<1x128xf32>
    %c0_58 = arith.constant 0 : index
    %c0_59 = arith.constant 0 : index
    %175 = vector.load %arg16[%c0_58, %c0_59] : memref<1x128xf32, #tpu.memory_space<vmem>>, vector<1x128xf32>
    %176 = arith.mulf %160, %174 : vector<1x128xf32>
    %177 = arith.subf %175, %176 : vector<1x128xf32>
    %178 = vector.broadcast %174 : vector<1x128xf32> to vector<32x128xf32>
    %179 = arith.mulf %156, %178 : vector<32x128xf32>
    %180 = vector.broadcast %177 : vector<1x128xf32> to vector<32x128xf32>
    %181 = arith.addf %179, %180 : vector<32x128xf32>
    %182 = arith.addf %124, %181 : vector<32x128xf32>
    %cst_60 = arith.constant 0.000000e+00 : f32
    %183 = vector.broadcast %cst_60 : f32 to vector<32x128xf32>
    %184 = arith.maximumf %182, %183 : vector<32x128xf32>
    %c0_61 = arith.constant 0 : index
    %c0_62 = arith.constant 0 : index
    %185 = vector.load %arg17[%c0_61, %c0_62] : memref<32x128xf32, #tpu.memory_space<vmem>>, vector<32x128xf32>
    tpu.vector_store %arg17[%c0_61, %c0_62], %184 {strides = array<i32>} : memref<32x128xf32, #tpu.memory_space<vmem>>, vector<32x128xf32>,
    return
  }
}

</mosaic_0001>

<bundles_post_ra>
// kernel: tpu_custom_call.1
= control target key start
LH: loop header
LB: loop body
LE: loop exit
PB: predicated region body
PF: predicated region fallthrough
CT: control target
= control target key end

     0   :  { %s2850_s0 = inlined_call_operand.vmem [shape: f32[2,16,64], index: 0, kind: input, shape index: {}]   ;;  %s2851_s1 = inlined_call_operand.vmem [shape: f32[32,4], index: 1, kind: input, shape index: {}]   ;;  %s2852_s2 = inlined_call_operand.vmem [shape: bf16[192,128], index: 2, kind: input, shape index: {}]   ;;  %s2853_s3 = inlined_call_operand.vmem [shape: bf16[192,4], index: 3, kind: input, shape index: {}]   ;;  %s2854_s4 = inlined_call_operand.vmem [shape: f32[4,128], index: 4, kind: input, shape index: {}]   ;;  %s2855_s5 = inlined_call_operand.vmem [shape: f32[1,128], index: 5, kind: input, shape index: {}]   ;;  %s2856_s6 = inlined_call_operand.vmem [shape: f32[1,128], index: 6, kind: input, shape index: {}]   ;;  %s2857_s7 = inlined_call_operand.vmem [shape: bf16[384,128], index: 7, kind: input, shape index: {}]   ;;  %s2858_s8 = inlined_call_operand.vmem [shape: bf16[384,4], index: 8, kind: input, shape index: {}]   ;;  %s2859_s9 = inlined_call_operand.vmem [shape: f32[4,128], index: 9, kind: input, shape index: {}]   ;;  %s2860_s10 = inlined_call_operand.vmem [shape: f32[1,128], index: 10, kind: input, shape index: {}]   ;;  %s2861_s11 = inlined_call_operand.vmem [shape: f32[1,128], index: 11, kind: input, shape index: {}]   ;;  %s2862_s12 = inlined_call_operand.vmem [shape: bf16[64,128], index: 12, kind: input, shape index: {}]   ;;  %s2863_s13 = inlined_call_operand.vmem [shape: bf16[64,4], index: 13, kind: input, shape index: {}]   ;;  %s2864_s14 = inlined_call_operand.vmem [shape: f32[4,128], index: 14, kind: input, shape index: {}]   ;;  %s2865_s15 = inlined_call_operand.vmem [shape: f32[1,128], index: 15, kind: input, shape index: {}]   ;;  %s2866_s16 = inlined_call_operand.vmem [shape: f32[1,128], index: 16, kind: input, shape index: {}]   ;;  %s2867_s17 = inlined_call_operand.hbm [shape: f32[32,128], index: 17, kind: output, shape index: {}]  }
   0x1   :  { %2870 = sst [smem:[#allocation5_spill]] %s2850_s0 }
   0x2   :  { %2871 = sst [smem:[#allocation6_spill]] %s2851_s1 }
   0x3   :  { %s2872_s26 = sld [smem:[#allocation5_spill]]  ;;  %v70_v3 = vlaneseq  ;;  %v2138_v7 = vmov 0   ;;  %v2026_v10 = vld [vmem:[%s2853_s3] sm:$0xff]   ;;  %s2139_s20 = smov 64   ;;  %v2028_v14 = vld [vmem:[%s2853_s3 + $0x8] sm:$0xff]   ;;  %v2030_v21 = vld [vmem:[%s2853_s3 + $0x10] sm:$0xff]  }
   0x4   :  { %237 = vmatprep.subr.bf16.mxu0 %v2138_v7  ;;  %391 = vmatprep.subr.bf16.mxu1 %v2138_v7  ;;  %v2027_v12 = vld [vmem:[%s2852_s2] sm:$0xff]   ;;  %v2029_v16 = vld [vmem:[%s2852_s2 + $0x8] sm:$0xff]   ;;  %vm102_vm1 = vcmask 523264   ;;  %v2031_v24 = vld [vmem:[%s2852_s2 + $0x10] sm:$0xff]  }
   0x5   :  { %1983 = vset.pattern.permute.xlu1 %v2138_v7  ;;  %v2265_v13 = vshrl.u32 %v70_v3, 7  ;;  %238 = vmatpush1.bf16.msra.mxu0 %v2026_v10  ;;  %v2032_v28 = vld [vmem:[%s2853_s3 + $0x18] sm:$0xff]   ;;  %v2034_v32 = vld [vmem:[%s2853_s3 + $0x20] sm:$0xff]   ;;  %v2036_v34 = vld [vmem:[%s2853_s3 + $0x28] sm:$0xff]  }
   0x6   :  { %392 = vmatpush1.bf16.msra.mxu1 %v2027_v12  ;;  %239 = vmatprep.subr.bf16.mxu0 %v2138_v7  ;;  %v2033_v31 = vld [vmem:[%s2852_s2 + $0x18] sm:$0xff]   ;;  %v2035_v33 = vld [vmem:[%s2852_s2 + $0x20] sm:$0xff]   ;;  %v2037_v35 = vld [vmem:[%s2852_s2 + $0x28] sm:$0xff]  }
   0x7   :  { %393 = vmatprep.subr.bf16.mxu1 %v2138_v7  ;;  %vm81_vm0 = vcmp.lt.s32.totalorder %v2265_v13, 7  ;;  %vm72_vm2 = vcmp.lt.s32.totalorder %v2265_v13, 1  ;;  %v2038_v36 = vld [vmem:[%s2853_s3 + $0x30] sm:$0xff]   ;;  %v2040_v38 = vld [vmem:[%s2853_s3 + $0x38] sm:$0xff]   ;;  %v2042_v40 = vld [vmem:[%s2853_s3 + $0x40] sm:$0xff]  }
   0x8   :  { %v2039_v37 = vld [vmem:[%s2852_s2 + $0x30] sm:$0xff]   ;;  %v2041_v39 = vld [vmem:[%s2852_s2 + $0x38] sm:$0xff]   ;;  %v2043_v41 = vld [vmem:[%s2852_s2 + $0x40] sm:$0xff]  }
   0x9   :  { %v2239_v0 = vld [vmem:[%s2872_s26] sm:$0xff]  ;;  %v2244_v1 = vld [vmem:[%s2872_s26 + $0x8] sm:$0xff]  ;;  %v60_v2 = vld [vmem:[%s2872_s26 + $0x10] sm:$0xff]  ;;  %240 = vmatpush1.bf16.msra.mxu0 %v2028_v14 }
   0xa   :  { %v1973_v4 = vpack.i.bf16 %v2244_v1, %v2239_v0  ;;  %v61_v5 = vld [vmem:[%s2872_s26 + $0x18] sm:$0xff]  ;;  %v78_v6 = vrot.slane %v60_v2, 1  ;;  %v77_v15 = vrot.slane %v2239_v0, 1  ;;  %v79_v17 = vrot.slane %v2244_v1, 1  ;;  %394 = vmatpush1.bf16.msra.mxu1 %v2029_v16  ;;  %241 = vmatprep.subr.bf16.mxu0 %v2138_v7  ;;  %v2044_v42 = vld [vmem:[%s2853_s3 + $0x48] sm:$0xff]   ;;  %v2046_v44 = vld [vmem:[%s2853_s3 + $0x50] sm:$0xff]  }
   0xb   :  { %v80_v8 = vrot.slane %v61_v5, 1  ;;  %v2256_v9 = vpack.c.bf16 %v61_v5, %v60_v2  ;;  %v1978_v11 = vpack.i.bf16 %v61_v5, %v60_v2  ;;  %v67_v26 = vrot.slane %v60_v2, 7  ;;  %395 = vmatprep.subr.bf16.mxu1 %v2138_v7  ;;  %v2045_v43 = vld [vmem:[%s2852_s2 + $0x48] sm:$0xff]   ;;  %v2047_v45 = vld [vmem:[%s2852_s2 + $0x50] sm:$0xff]   ;;  %v2048_v46 = vld [vmem:[%s2853_s3 + $0x58] sm:$0xff]  }
   0xc   :  { %1974 = vrot.lane.b32.xlu0 %v1973_v4, %s2139_s20  ;;  %v82_v18 = vsel %vm81_vm0, %v77_v15, %v79_v17  ;;  %v84_v19 = vsel %vm81_vm0, %v79_v17, %v77_v15  ;;  %v69_v27 = vrot.slane %v61_v5, 7  ;;  %v2049_v47 = vld [vmem:[%s2852_s2 + $0x58] sm:$0xff]  }
   0xd   :  { %v83_v20 = vsel %vm81_vm0, %v78_v6, %v80_v8  ;;  %v108_v22 = vpack.c.bf16 %v84_v19, %v82_v18  ;;  %v85_v23 = vsel %vm81_vm0, %v80_v8, %v78_v6  ;;  %242 = vmatpush1.bf16.msra.mxu0 %v2030_v21 }
   0xe   :  { %v2293_v25 = vpack.c.bf16 %v85_v23, %v83_v20  ;;  %v2304_v29 = vsel %vm72_vm2, %v67_v26, %v69_v27  ;;  %v2308_v30 = vsel %vm72_vm2, %v69_v27, %v67_v26  ;;  %396 = vmatpush1.bf16.msra.mxu1 %v2031_v24  ;;  %243 = vmatprep.subr.bf16.mxu0 %v2138_v7 }
   0xf   :  { %1737 = vmatprep.mubr.msk.bf16.mxu0 %vm102_vm1, %v108_v22  ;;  %1751 = vmatprep.mubr.msk.bf16.mxu1 %vm102_vm1, %v108_v22 }
  0x10   :  { %1979 = vrot.lane.b32.xlu0 %v1978_v11, %s2139_s20  ;;  %397 = vmatprep.subr.bf16.mxu1 %v2138_v7 }
  0x11   :  { %244 = vmatpush1.bf16.msra.mxu0 %v2032_v28 }
  0x12   :  { %398 = vmatpush1.bf16.msra.mxu1 %v2033_v31  ;;  %245 = vmatprep.subr.bf16.mxu0 %v2138_v7 }
  0x13   :  { %399 = vmatprep.subr.bf16.mxu1 %v2138_v7 }
  0x15   :  { %246 = vmatpush1.bf16.msra.mxu0 %v2034_v32 }
  0x16   :  { %400 = vmatpush1.bf16.msra.mxu1 %v2035_v33  ;;  %247 = vmatprep.subr.bf16.mxu0 %v2138_v7 }
  0x17   :  { %401 = vmatprep.subr.bf16.mxu1 %v2138_v7 }
  0x19   :  { %248 = vmatpush1.bf16.msra.mxu0 %v2036_v34 }
  0x1a   :  { %402 = vmatpush1.bf16.msra.mxu1 %v2037_v35  ;;  %249 = vmatprep.subr.bf16.mxu0 %v2138_v7 }
  0x1b   :  { %403 = vmatprep.subr.bf16.mxu1 %v2138_v7 }
  0x1d   :  { %250 = vmatpush1.bf16.msra.mxu0 %v2038_v36 }
  0x1e   :  { %404 = vmatpush1.bf16.msra.mxu1 %v2039_v37  ;;  %251 = vmatprep.subr.bf16.mxu0 %v2138_v7 }
  0x1f   :  { %405 = vmatprep.subr.bf16.mxu1 %v2138_v7 }
  0x21   :  { %252 = vmatpush1.bf16.msra.mxu0 %v2040_v38 }
  0x22   :  { %406 = vmatpush1.bf16.msra.mxu1 %v2041_v39  ;;  %253 = vmatprep.subr.bf16.mxu0 %v2138_v7 }
  0x23   :  { %407 = vmatprep.subr.bf16.mxu1 %v2138_v7 }
  0x25   :  { %254 = vmatpush1.bf16.msra.mxu0 %v2042_v40 }
  0x26   :  { %408 = vmatpush1.bf16.msra.mxu1 %v2043_v41  ;;  %255 = vmatprep.subr.bf16.mxu0 %v2138_v7 }
  0x27   :  { %409 = vmatprep.subr.bf16.mxu1 %v2138_v7 }
  0x29   :  { %256 = vmatpush1.bf16.msra.mxu0 %v2044_v42 }
  0x2a   :  { %410 = vmatpush1.bf16.msra.mxu1 %v2045_v43  ;;  %257 = vmatprep.subr.bf16.mxu0 %v2138_v7 }
  0x2b   :  { %411 = vmatprep.subr.bf16.mxu1 %v2138_v7 }
  0x2d   :  { %258 = vmatpush1.bf16.msra.mxu0 %v2046_v44 }
  0x2e   :  { %412 = vmatpush1.bf16.msra.mxu1 %v2047_v45  ;;  %259 = vmatprep.subr.bf16.mxu0 %v2138_v7 }
  0x2f   :  { %413 = vmatprep.subr.bf16.mxu1 %v2138_v7 }
  0x31   :  { %260 = vmatpush1.bf16.msra.mxu0 %v2048_v46 }
  0x32   :  { %414 = vmatpush1.bf16.msra.mxu1 %v2049_v47 }
  0x33   :  { %22 = vsyncpa [#allocation3], 0  ;;  %v68_v48 = vrot.slane %v2244_v1, 7  ;;  %v66_v49 = vrot.slane %v2239_v0, 7  ;;  %v2140_v0 = vmov 2   ;;  %s2873_s25 = sld [smem:[#allocation6_spill]] }
  0x34   :  { %1985 = vset.pattern.permute.xlu0 %v2140_v0  ;;  %v2141_v17 = vmov 3   ;;  %v2142_v18 = vmov 1   ;;  %v2051_v31 = vld [vmem:[%s2858_s8] sm:$0xff]   ;;  %v2053_v33 = vld [vmem:[%s2858_s8 + $0x48] sm:$0xff]   ;;  %v2056_v36 = vld [vmem:[%s2858_s8 + $0x50] sm:$0xff]  }
  0x35   :  { %v73_v51 = vsel %vm72_vm2, %v66_v49, %v68_v48  ;;  %v75_v52 = vsel %vm72_vm2, %v68_v48, %v66_v49  ;;  %v2052_v32 = vld [vmem:[%s2858_s8 + $0x80] sm:$0xff]   ;;  %v2054_v34 = vld [vmem:[%s2858_s8 + $0x8] sm:$0xff]   ;;  %v2057_v37 = vld [vmem:[%s2858_s8 + $0x10] sm:$0xff]  }
  0x36   :  { %1901 = vmatprep.subr.bf16.mxu1 %v2052_v32  ;;  %v2055_v35 = vld [vmem:[%s2858_s8 + $0x88] sm:$0xff]   ;;  %v2058_v38 = vld [vmem:[%s2858_s8 + $0x90] sm:$0xff]   ;;  %v2059_v39 = vld [vmem:[%s2858_s8 + $0x58] sm:$0xff]  }
  0x37   :  { %v2060_v40 = vld [vmem:[%s2858_s8 + $0x18] sm:$0xff]   ;;  %v2062_v42 = vld [vmem:[%s2858_s8 + $0x60] sm:$0xff]   ;;  %v2065_v45 = vld [vmem:[%s2858_s8 + $0x68] sm:$0xff]  }
  0x38   :  { %v2061_v41 = vld [vmem:[%s2858_s8 + $0x98] sm:$0xff]   ;;  %v2063_v43 = vld [vmem:[%s2858_s8 + $0x20] sm:$0xff]   ;;  %v2066_v46 = vld [vmem:[%s2858_s8 + $0x28] sm:$0xff]  }
  0x39   :  { %v2399_v1 = vld [vmem:[%s2873_s25] sm:$0xff]  ;;  %v2409_v11 = vld [vmem:[%s2873_s25 + $0x8] sm:$0xff]  ;;  %v2415_v16 = vld [vmem:[%s2873_s25 + $0x10] sm:$0xff] }
  0x3a   :  { %v2429_v28 = vld [vmem:[%s2873_s25 + $0x18] sm:$0xff]  ;;  %v2064_v44 = vld [vmem:[%s2858_s8 + $0xa0] sm:$0xff]   ;;  %v2067_v47 = vld [vmem:[%s2858_s8 + $0xa8] sm:$0xff]  }
  0x3b   :  { %v2068_v48 = vld [vmem:[%s2858_s8 + $0x70] sm:$0xff]  }
  0x3c   :  { %v2070_v49 = vld [vmem:[%s2858_s8 + $0xb0] sm:$0xff]  }
  0x7e   :  { %v1975_v50 = vpop.permute.xlu0 %1974 }
  0x7f   :  { %v1977_v53 = vunpack.i.h.bf16 %v1975_v50  ;;  %v1976_v54 = vunpack.i.l.bf16 %v1975_v50  ;;  %v2069_v50 = vld [vmem:[%s2858_s8 + $0x30] sm:$0xff]  }
  0x81   :  { %v103_v55 = vsel %vm102_vm1, %v75_v52, %v1976_v54  ;;  %v104_v56 = vsel %vm102_vm1, %v73_v51, %v1977_v53  ;;  %v2071_v51 = vld [vmem:[%s2858_s8 + $0x78] sm:$0xff]   ;;  %v2074_v54 = vld [vmem:[%s2857_s7 + $0x40] sm:$0xff]  }
  0x82   :  { %v107_v57 = vpack.c.bf16 %v104_v56, %v103_v55  ;;  %v1980_v58 = vpop.permute.xlu0 %1979  ;;  %v2073_v52 = vld [vmem:[%s2858_s8 + $0xb8] sm:$0xff]   ;;  %v2521_v55 = vld [vmem:[%s2857_s7 + $0x80] sm:$0xff]  }
  0x83   :  { %v1982_v59 = vunpack.i.h.bf16 %v1980_v58  ;;  %v1981_v60 = vunpack.i.l.bf16 %v1980_v58  ;;  %v2072_v53 = vld [vmem:[%s2858_s8 + $0x38] sm:$0xff]   ;;  %v2525_v58 = vsub.s32 0, %v2265_v13 }
  0x84   :  { %270 = vmatmul.mubr.bf16.vlgmr.msra.gmra.mrb[0].mxu0 %v107_v57  ;;  %424 = vmatmul.mubr.bf16.vlgmr.msra.gmra.mrb[0].mxu1 %v107_v57 }
  0x85   :  { %1738 = vmatprep.mubr.msk.bf16.mxu0 %vm102_vm1, %v2293_v25  ;;  %v105_v61 = vsel %vm102_vm1, %v2308_v30, %v1981_v60  ;;  %v106_v62 = vsel %vm102_vm1, %v2304_v29, %v1982_v59  ;;  %1752 = vmatprep.mubr.msk.bf16.mxu1 %vm102_vm1, %v2293_v25  ;;  %v2050_v30 = vld [vmem:[%s2858_s8 + $0x40] sm:$0xff]   ;;  %v2531_v60 = vsub.s32 1, %v2265_v13 }
  0x86   :  { %v109_v63 = vpack.c.bf16 %v106_v62, %v105_v61  ;;  %1813 = vmatprep.subr.bf16.mxu0 %v2050_v30  ;;  %1902 = vmatpush3.bf16.msra.mxu1 %v2052_v32  ;;  %v290_v59 = vld [vmem:[%s2854_s4] sm:$0xf] }
  0x87   :  { %1814 = vmatpush3.bf16.msra.mxu0 %v2051_v31  ;;  %1903 = vmatprep.subr.bf16.mxu1 %v2055_v35  ;;  %v314_v62 = vrot.slane %v290_v59, %v2525_v58 }
  0x88   :  { %1815 = vmatprep.subr.bf16.mxu0 %v2053_v33 }
  0x8a   :  { %1904 = vmatpush3.bf16.msra.mxu1 %v2055_v35 }
  0x8b   :  { %1816 = vmatpush3.bf16.msra.mxu0 %v2054_v34  ;;  %1905 = vmatprep.subr.bf16.mxu1 %v2058_v38 }
  0x8c   :  { %278 = vmatmul.mubr.bf16.gmra.mrb[4].mxu0 %v109_v63  ;;  %432 = vmatmul.mubr.bf16.gmra.mrb[4].mxu1 %v109_v63 }
  0x8d   :  { %1817 = vmatprep.subr.bf16.mxu0 %v2056_v36 }
  0x8e   :  { %1906 = vmatpush3.bf16.msra.mxu1 %v2058_v38 }
  0x8f   :  { %1818 = vmatpush3.bf16.msra.mxu0 %v2057_v37  ;;  %1907 = vmatprep.subr.bf16.mxu1 %v2061_v41 }
  0x90   :  { %1819 = vmatprep.subr.bf16.mxu0 %v2059_v39 }
  0x92   :  { %1908 = vmatpush3.bf16.msra.mxu1 %v2061_v41 }
  0x93   :  { %1820 = vmatpush3.bf16.msra.mxu0 %v2060_v40  ;;  %1909 = vmatprep.subr.bf16.mxu1 %v2064_v44 }
  0x94   :  { %1821 = vmatprep.subr.bf16.mxu0 %v2062_v42 }
  0x96   :  { %1910 = vmatpush3.bf16.msra.mxu1 %v2064_v44 }
  0x97   :  { %1822 = vmatpush3.bf16.msra.mxu0 %v2063_v43  ;;  %1911 = vmatprep.subr.bf16.mxu1 %v2067_v47 }
  0x98   :  { %1823 = vmatprep.subr.bf16.mxu0 %v2065_v45 }
  0x9a   :  { %1912 = vmatpush3.bf16.msra.mxu1 %v2067_v47 }
  0x9b   :  { %1824 = vmatpush3.bf16.msra.mxu0 %v2066_v46  ;;  %1913 = vmatprep.subr.bf16.mxu1 %v2070_v49 }
  0x9c   :  { %1825 = vmatprep.subr.bf16.mxu0 %v2068_v48 }
  0x9e   :  { %1914 = vmatpush3.bf16.msra.mxu1 %v2070_v49 }
  0x9f   :  { %1826 = vmatpush3.bf16.msra.mxu0 %v2069_v50  ;;  %1915 = vmatprep.subr.bf16.mxu1 %v2073_v52 }
  0xa0   :  { %1827 = vmatprep.subr.bf16.mxu0 %v2071_v51 }
  0xa2   :  { %1916 = vmatpush3.bf16.msra.mxu1 %v2073_v52 }
  0xa3   :  { %1828 = vmatpush3.bf16.msra.mxu0 %v2072_v53  ;;  %1921 = vmatprep.subr.bf16.mxu1 %v2521_v55 }
  0xa4   :  { %1851 = vmatprep.subr.bf16.mxu0 %v2074_v54 }
 0x157   :  { %v271_v2 = vpop.f32.mrb[0].mxu0  ;;  %v2401_v3 = vpop.f32.mrb[0].mxu1 }
 0x158   :  { %v286_v4 = vmul.f32 %v271_v2, %v2399_v1  ;;  %v273_v5 = vpop.f32.mrb[1].mxu0  ;;  %v427_v6 = vpop.f32.mrb[1].mxu1  ;;  %v459_v2 = vrot.slane %v290_v59, %v2531_v60 }
 0x159   :  { %v274_v8 = vpop.f32.mrb[2].mxu0  ;;  %v2404_v10 = vpop.f32.mrb[2].mxu1 }
 0x15a   :  { %v430_v12 = vpop.f32.mrb[3].mxu1  ;;  %469 = vperm.xlu0 %1985, %v286_v4   ;;  %293 = vperm.xlu1 %1983, %v286_v4   ;;  %v276_v14 = vpop.f32.mrb[3].mxu0  ;;  %v287_v15 = vmul.f32 %v274_v8, %v2409_v11 }
 0x15e   :  { %1990 = vset.pattern.permute.xlu0 %v2141_v17  ;;  %1984 = vset.pattern.permute.xlu1 %v2142_v18 }
 0x15f   :  { %441 = vperm.xlu1 %1984, %v286_v4   ;;  %501 = vperm.xlu0 %1990, %v287_v15   ;;  %v279_v19 = vpop.f32.mrb[4].mxu0  ;;  %v2419_v20 = vpop.f32.mrb[4].mxu1 }
 0x160   :  { %v288_v21 = vmul.f32 %v279_v19, %v2415_v16  ;;  %v281_v22 = vpop.f32.mrb[5].mxu0  ;;  %v435_v23 = vpop.f32.mrb[5].mxu1  ;;  %v2541_v19 = vsub.s32 3, %v2265_v13 }
 0x161   :  { %v282_v24 = vpop.f32.mrb[6].mxu0  ;;  %v2422_v25 = vpop.f32.mrb[6].mxu1 }
 0x162   :  { %v284_v26 = vpop.f32.mrb[7].mxu0  ;;  %v438_v27 = vpop.f32.mrb[7].mxu1  ;;  %v289_v29 = vmul.f32 %v282_v24, %v2429_v28 }
 0x163   :  { %1986 = vset.pattern.permute.xlu1 %v2141_v17  ;;  %1991 = vset.pattern.permute.xlu0 %v2138_v7  ;;  %v515_v26 = vrot.slane %v290_v59, %v2541_v19 }
 0x164   :  { %497 = vperm.xlu1 %1986, %v286_v4   ;;  %303 = vperm.xlu0 %1991, %v288_v21   ;;  %v2536_v4 = vsub.s32 2, %v2265_v13  ;;  %v2078_v13 = vld [vmem:[%s2857_s7 + $0x8] sm:$0xff]  }
 0x166   :  { %v487_v14 = vrot.slane %v290_v59, %v2536_v4 }
 0x168   :  { %1987 = vset.pattern.permute.xlu1 %v2138_v7  ;;  %1993 = vset.pattern.permute.xlu0 %v2140_v0 }
 0x169   :  { %298 = vperm.xlu1 %1987, %v287_v15   ;;  %477 = vperm.xlu0 %1993, %v288_v21  }
 0x16d   :  { %1988 = vset.pattern.permute.xlu1 %v2142_v18  ;;  %1994 = vset.pattern.permute.xlu0 %v2138_v7 }
 0x16e   :  { %445 = vperm.xlu1 %1988, %v287_v15   ;;  %308 = vperm.xlu0 %1994, %v289_v29  }
 0x172   :  { %1989 = vset.pattern.permute.xlu1 %v2140_v0  ;;  %1997 = vset.pattern.permute.xlu0 %v2141_v17 }
 0x173   :  { %473 = vperm.xlu1 %1989, %v287_v15   ;;  %509 = vperm.xlu0 %1997, %v289_v29  }
 0x177   :  { %1992 = vset.pattern.permute.xlu1 %v2142_v18  ;;  %1999 = vset.pattern.permute.xlu0 %v2142_v18 }
 0x178   :  { %449 = vperm.xlu1 %1992, %v288_v21  }
 0x17c   :  { %453 = vperm.xlu1 %1992, %v289_v29  }
 0x180   :  { %1995 = vset.pattern.permute.xlu1 %v2140_v0 }
 0x181   :  { %481 = vperm.xlu1 %1995, %v289_v29  }
 0x185   :  { %1996 = vset.pattern.permute.xlu1 %v2141_v17 }
 0x186   :  { %505 = vperm.xlu1 %1996, %v288_v21  }
 0x18a   :  { %1998 = vset.pattern.permute.xlu1 %v2138_v7 }
 0x1d9   :  { %v294_v56 = vpop.permute.xlu1 %293  ;;  %v470_v61 = vpop.permute.xlu0 %469 }
 0x1da   :  { %v315_v5 = vmul.f32 %v314_v62, %v294_v56  ;;  %v488_v24 = vmul.f32 %v487_v14, %v470_v61 }
 0x1dc   :  { %v426_v15 = vadd.f32 %v2401_v3, %v315_v5 }
 0x1de   :  { %v442_v57 = vpop.permute.xlu1 %441  ;;  %v502_v12 = vpop.permute.xlu0 %501 }
 0x1df   :  { %v460_v8 = vmul.f32 %v459_v2, %v442_v57  ;;  %v517_v3 = vmul.f32 %v515_v26, %v502_v12 }
 0x1e1   :  { %v464_v21 = vadd.f32 %v460_v8, %v426_v15 }
 0x1e3   :  { %v498_v63 = vpop.permute.xlu1 %497  ;;  %v304_v27 = vpop.permute.xlu0 %303  ;;  %v492_v30 = vadd.f32 %v488_v24, %v464_v21 }
 0x1e4   :  { %v516_v31 = vmul.f32 %v515_v26, %v498_v63  ;;  %v317_v47 = vmul.f32 %v314_v62, %v304_v27 }
 0x1e6   :  { %v520_v37 = vadd.f32 %v516_v31, %v492_v30 }
 0x1e8   :  { %v299_v6 = vpop.permute.xlu1 %298  ;;  %v478_v34 = vpop.permute.xlu0 %477  ;;  %v535_v41 = vmul.f32 %v520_v37, %v520_v37 }
 0x1e9   :  { %v316_v22 = vmul.f32 %v314_v62, %v299_v6  ;;  %v490_v59 = vmul.f32 %v487_v14, %v478_v34 }
 0x1eb   :  { %v429_v32 = vadd.f32 %v2404_v10, %v316_v22  ;;  %v434_v10 = vadd.f32 %v2419_v20, %v317_v47 }
 0x1ed   :  { %v446_v23 = vpop.permute.xlu1 %445  ;;  %v309_v42 = vpop.permute.xlu0 %308 }
 0x1ee   :  { %v461_v29 = vmul.f32 %v459_v2, %v446_v23  ;;  %v318_v48 = vmul.f32 %v314_v62, %v309_v42 }
 0x1f0   :  { %v465_v35 = vadd.f32 %v461_v29, %v429_v32  ;;  %v437_v51 = vadd.f32 %v2422_v25, %v318_v48 }
 0x1f2   :  { %v474_v33 = vpop.permute.xlu1 %473  ;;  %v510_v57 = vpop.permute.xlu0 %509 }
 0x1f3   :  { %v489_v36 = vmul.f32 %v487_v14, %v474_v33  ;;  %v519_v5 = vmul.f32 %v515_v26, %v510_v57 }
 0x1f5   :  { %v493_v38 = vadd.f32 %v489_v36, %v465_v35 }
 0x1f7   :  { %v521_v39 = vadd.f32 %v517_v3, %v493_v38  ;;  %v450_v40 = vpop.permute.xlu1 %449 }
 0x1f8   :  { %v462_v49 = vmul.f32 %v459_v2, %v450_v40 }
 0x1f9   :  { %v536_v43 = vmul.f32 %v521_v39, %v521_v39  ;;  %v524_v44 = vadd.f32 %v521_v39, %v520_v37 }
 0x1fa   :  { %v466_v54 = vadd.f32 %v462_v49, %v434_v10 }
 0x1fb   :  { %v454_v45 = vpop.permute.xlu1 %453  ;;  %v539_v46 = vadd.f32 %v536_v43, %v535_v41  ;;  %v552_v43 = vld [vmem:[%s2855_s5] sm:$0x1] }
 0x1fc   :  { %v463_v50 = vmul.f32 %v459_v2, %v454_v45  ;;  %v494_v6 = vadd.f32 %v490_v59, %v466_v54 }
 0x1fe   :  { %v467_v56 = vadd.f32 %v463_v50, %v437_v51 }
 0x200   :  { %v482_v52 = vpop.permute.xlu1 %481 }
 0x201   :  { %v491_v53 = vmul.f32 %v487_v14, %v482_v52 }
 0x203   :  { %v495_v61 = vadd.f32 %v491_v53, %v467_v56 }
 0x205   :  { %v506_v63 = vpop.permute.xlu1 %505  ;;  %v523_v12 = vadd.f32 %v519_v5, %v495_v61 }
 0x206   :  { %v518_v8 = vmul.f32 %v515_v26, %v506_v63 }
 0x207   :  { %v538_v2 = vmul.f32 %v523_v12, %v523_v12 }
 0x208   :  { %v522_v15 = vadd.f32 %v518_v8, %v494_v6 }
 0x20a   :  { %v525_v62 = vadd.f32 %v524_v44, %v522_v15  ;;  %v537_v21 = vmul.f32 %v522_v15, %v522_v15 }
 0x20c   :  { %v526_v22 = vadd.f32 %v525_v62, %v523_v12  ;;  %v540_v20 = vadd.f32 %v539_v46, %v537_v21  ;;  %v556_v46 = vld [vmem:[%s2856_s6] sm:$0x1] }
 0x20e   :  { %v527_v23 = vrot.slane %v526_v22, 4  ;;  %v541_v25 = vadd.f32 %v540_v20, %v538_v2 }
 0x210   :  { %v528_v24 = vadd.f32 %v527_v23, %v526_v22  ;;  %v542_v27 = vrot.slane %v541_v25, 4  ;;  %v2075_v23 = vld [vmem:[%s2857_s7] sm:$0xff]  }
 0x212   :  { %v529_v29 = vrot.slane %v528_v24, 2  ;;  %v543_v30 = vadd.f32 %v542_v27, %v541_v25 }
 0x214   :  { %v530_v31 = vadd.f32 %v529_v29, %v528_v24  ;;  %v544_v14 = vrot.slane %v543_v30, 2 }
 0x216   :  { %v531_v32 = vrot.slane %v530_v31, 1  ;;  %v545_v33 = vadd.f32 %v544_v14, %v543_v30 }
 0x218   :  { %v532_v34 = vadd.f32 %v531_v32, %v530_v31  ;;  %v546_v35 = vrot.slane %v545_v33, 1 }
 0x21a   :  { %v534_v26 = vmul.f32 0.03125, %v532_v34  ;;  %v547_v36 = vadd.f32 %v546_v35, %v545_v33 }
 0x21c   :  { %v548_v3 = vmul.f32 0.03125, %v547_v36  ;;  %v549_v38 = vmul.f32 %v534_v26, %v534_v26  ;;  %v2079_v36 = vld [vmem:[%s2857_s7 + $0x88] sm:$0xff]  }
 0x21e   :  { %v550_v40 = vsub.f32 %v548_v3, %v549_v38  ;;  %v2080_v38 = vld [vmem:[%s2857_s7 + $0x50] sm:$0xff]  }
 0x220   :  { %v551_v41 = vmax.f32 %v550_v40, 0.0  ;;  %v2082_v40 = vld [vmem:[%s2857_s7 + $0x90] sm:$0xff]  }
 0x222   :  { %v553_v42 = vadd.f32 1e-05, %v551_v41  ;;  %v2081_v41 = vld [vmem:[%s2857_s7 + $0x10] sm:$0xff]  }
 0x224   :  { %2106 = vrsqrt.f32 %v553_v42  ;;  %v2083_v42 = vld [vmem:[%s2857_s7 + $0x58] sm:$0xff]  }
 0x22e   :  { %v2107_v44 = vpop.eup %2106 }
 0x22f   :  { %v555_v45 = vmul.f32 %v2107_v44, %v552_v43  ;;  %v2084_v43 = vld [vmem:[%s2857_s7 + $0x18] sm:$0xff]   ;;  %v2086_v44 = vld [vmem:[%s2857_s7 + $0x60] sm:$0xff]  }
 0x231   :  { %v557_v47 = vmul.f32 %v555_v45, %v534_v26  ;;  %v563_v48 = vrot.slane %v555_v45, %v2525_v58  ;;  %v2077_v26 = vld [vmem:[%s2857_s7 + $0x48] sm:$0xff]   ;;  %v2088_v45 = vld [vmem:[%s2857_s7 + $0xa0] sm:$0xff]  }
 0x233   :  { %v567_v49 = vmul.f32 %v563_v48, %v522_v15  ;;  %v558_v50 = vsub.f32 %v556_v46, %v557_v47  ;;  %v565_v10 = vmul.f32 %v563_v48, %v520_v37  ;;  %v566_v51 = vmul.f32 %v563_v48, %v521_v39  ;;  %v2087_v46 = vld [vmem:[%s2857_s7 + $0x20] sm:$0xff]   ;;  %v2089_v47 = vld [vmem:[%s2857_s7 + $0x68] sm:$0xff]  }
 0x234   :  { %v568_v52 = vmul.f32 %v563_v48, %v523_v12  ;;  %v2091_v48 = vld [vmem:[%s2857_s7 + $0xa8] sm:$0xff]  }
 0x235   :  { %v573_v53 = vrot.slane %v558_v50, %v2525_v58  ;;  %v2092_v50 = vld [vmem:[%s2857_s7 + $0x70] sm:$0xff]  }
 0x237   :  { %v575_v54 = vadd.f32 %v573_v53, %v565_v10  ;;  %v576_v56 = vadd.f32 %v573_v53, %v566_v51  ;;  %v577_v57 = vadd.f32 %v573_v53, %v567_v49  ;;  %v578_v59 = vadd.f32 %v573_v53, %v568_v52  ;;  %v2090_v49 = vld [vmem:[%s2857_s7 + $0x28] sm:$0xff]   ;;  %v2094_v10 = vld [vmem:[%s2857_s7 + $0xb0] sm:$0xff]   ;;  %v2095_v52 = vld [vmem:[%s2857_s7 + $0x78] sm:$0xff]  }
 0x238   :  { %v2093_v51 = vld [vmem:[%s2857_s7 + $0x30] sm:$0xff]   ;;  %v2097_v53 = vld [vmem:[%s2857_s7 + $0xb8] sm:$0xff]  }
 0x239   :  { %v579_v61 = vmax.f32 %v575_v54, 0.0  ;;  %v580_v63 = vmax.f32 %v576_v56, 0.0  ;;  %v581_v5 = vmax.f32 %v577_v57, 0.0  ;;  %v582_v6 = vmax.f32 %v578_v59, 0.0  ;;  %v2096_v54 = vld [vmem:[%s2857_s7 + $0x38] sm:$0xff]   ;;  %v2098_v56 = vld [vmem:[%s2863_s13] sm:$0xff]  }
 0x23a   :  { %v2102_v57 = vld [vmem:[%s2862_s12] sm:$0xff]   ;;  %v2099_v59 = vld [vmem:[%s2863_s13 + $0x8] sm:$0xff]  }
 0x23b   :  { %v583_v8 = vrot.slane %v579_v61, 7  ;;  %v585_v62 = vrot.slane %v580_v63, 7  ;;  %v600_v21 = vpack.c.bf16 %v580_v63, %v579_v61  ;;  %v591_v2 = vrot.slane %v579_v61, 1  ;;  %v2103_v61 = vld [vmem:[%s2862_s12 + $0x8] sm:$0xff]  }
 0x23c   :  { %v593_v22 = vrot.slane %v580_v63, 1  ;;  %v592_v15 = vrot.slane %v581_v5, 1  ;;  %v594_v20 = vrot.slane %v582_v6, 1  ;;  %v2555_v37 = vpack.c.bf16 %v582_v6, %v581_v5  ;;  %v2112_v63 = vld [vmem:[%s2872_s26] sm:$0xff] }
 0x23d   :  { %877 = vmatprep.mubr.bf16.mxu0 %v600_v21  ;;  %v587_v39 = vsel %vm72_vm2, %v583_v8, %v585_v62  ;;  %v589_v12 = vsel %vm72_vm2, %v585_v62, %v583_v8  ;;  %v584_v25 = vrot.slane %v581_v5, 7  ;;  %v586_v24 = vrot.slane %v582_v6, 7  ;;  %v2113_v5 = vld [vmem:[%s2872_s26 + $0x8] sm:$0xff]  ;;  %v2100_v8 = vld [vmem:[%s2863_s13 + $0x10] sm:$0xff]  }
 0x23e   :  { %v2564_v27 = vpack.c.bf16 %v587_v39, %v589_v12  ;;  %v595_v29 = vsel %vm81_vm0, %v591_v2, %v593_v22  ;;  %v597_v30 = vsel %vm81_vm0, %v593_v22, %v591_v2  ;;  %v596_v31 = vsel %vm81_vm0, %v592_v15, %v594_v20  ;;  %v2104_v62 = vld [vmem:[%s2862_s12 + $0x10] sm:$0xff]   ;;  %v2105_v2 = vld [vmem:[%s2862_s12 + $0x18] sm:$0xff]  }
 0x23f   :  { %v601_v14 = vpack.c.bf16 %v597_v30, %v595_v29  ;;  %v598_v32 = vsel %vm81_vm0, %v594_v20, %v592_v15  ;;  %v588_v33 = vsel %vm72_vm2, %v584_v25, %v586_v24  ;;  %v590_v34 = vsel %vm72_vm2, %v586_v24, %v584_v25 }
 0x240   :  { %878 = vmatmul.mubr.bf16.vlgmr.msra.gmra.mrb[8].mxu0 %v2564_v27  ;;  %v2579_v35 = vpack.c.bf16 %v598_v32, %v596_v31  ;;  %v2587_v3 = vpack.c.bf16 %v588_v33, %v590_v34  ;;  %v1356_v6 = vpack.c.bf16 %v2113_v5, %v2112_v63 }
 0x241   :  { %1917 = vmatprep.mubr.bf16.mxu1 %v601_v14  ;;  %1852 = vmatpush3.bf16.msra.mxu0 %v2075_v23 }
 0x242   :  { %885 = vmatprep.mubr.bf16.mxu0 %v2555_v37  ;;  %1918 = vmatmul.mubr.bf16.vlgmr.msra.gmra.mrb[8].mxu1 %v2579_v35 }
 0x243   :  { %1922 = vmatpush3.bf16.msra.mxu1 %v2521_v55  ;;  %1937 = vmatprep.mubr.bf16.mxu1 %v601_v14  ;;  %v2085_v55 = vld [vmem:[%s2857_s7 + $0x98] sm:$0xff]  }
 0x244   :  { %1853 = vmatprep.subr.bf16.mxu0 %v2077_v26  ;;  %1923 = vmatprep.subr.bf16.mxu1 %v2079_v36 }
 0x245   :  { %1854 = vmatpush3.bf16.msra.mxu0 %v2078_v13 }
 0x246   :  { %1855 = vmatprep.subr.bf16.mxu0 %v2080_v38 }
 0x247   :  { %1924 = vmatpush3.bf16.msra.mxu1 %v2079_v36 }
 0x248   :  { %886 = vmatmul.mubr.bf16.gmra.mrb[12].mxu0 %v2587_v3  ;;  %1925 = vmatprep.subr.bf16.mxu1 %v2082_v40 }
 0x249   :  { %1856 = vmatpush3.bf16.msra.mxu0 %v2081_v41  ;;  %1152 = vmatprep.mubr.bf16.mxu0 %v600_v21  ;;  %v2101_v21 = vld [vmem:[%s2863_s13 + $0x18] sm:$0xff]  }
 0x24a   :  { %1857 = vmatprep.subr.bf16.mxu0 %v2083_v42 }
 0x24b   :  { %1926 = vmatpush3.bf16.msra.mxu1 %v2082_v40 }
 0x24c   :  { %1927 = vmatprep.subr.bf16.mxu1 %v2085_v55 }
 0x24d   :  { %1858 = vmatpush3.bf16.msra.mxu0 %v2084_v43 }
 0x24e   :  { %1859 = vmatprep.subr.bf16.mxu0 %v2086_v44 }
 0x24f   :  { %1928 = vmatpush3.bf16.msra.mxu1 %v2085_v55 }
 0x250   :  { %1929 = vmatprep.subr.bf16.mxu1 %v2088_v45 }
 0x251   :  { %1860 = vmatpush3.bf16.msra.mxu0 %v2087_v46 }
 0x252   :  { %1861 = vmatprep.subr.bf16.mxu0 %v2089_v47 }
 0x253   :  { %1930 = vmatpush3.bf16.msra.mxu1 %v2088_v45 }
 0x254   :  { %1931 = vmatprep.subr.bf16.mxu1 %v2091_v48 }
 0x255   :  { %1862 = vmatpush3.bf16.msra.mxu0 %v2090_v49 }
 0x256   :  { %1863 = vmatprep.subr.bf16.mxu0 %v2092_v50 }
 0x257   :  { %1932 = vmatpush3.bf16.msra.mxu1 %v2091_v48 }
 0x258   :  { %1933 = vmatprep.subr.bf16.mxu1 %v2094_v10 }
 0x259   :  { %1864 = vmatpush3.bf16.msra.mxu0 %v2093_v51 }
 0x25a   :  { %1865 = vmatprep.subr.bf16.mxu0 %v2095_v52 }
 0x25b   :  { %1934 = vmatpush3.bf16.msra.mxu1 %v2094_v10 }
 0x25c   :  { %1935 = vmatprep.subr.bf16.mxu1 %v2097_v53 }
 0x25d   :  { %1866 = vmatpush3.bf16.msra.mxu0 %v2096_v54 }
 0x25e   :  { %1941 = vmatprep.subr.bf16.mxu0 %v2098_v56 }
 0x25f   :  { %1936 = vmatpush3.bf16.msra.mxu1 %v2097_v53 }
 0x260   :  { %1153 = vmatmul.mubr.bf16.vlgmr.msra.gmra.mrb[16].mxu0 %v2564_v27  ;;  %1953 = vmatprep.subr.bf16.mxu1 %v2102_v57 }
 0x261   :  { %1160 = vmatprep.mubr.bf16.mxu0 %v2555_v37  ;;  %1942 = vmatpush3.bf16.msra.mxu0 %v2098_v56 }
 0x262   :  { %1938 = vmatmul.mubr.bf16.vlgmr.msra.gmra.mrb[12].mxu1 %v2579_v35  ;;  %1943 = vmatprep.subr.bf16.mxu0 %v2099_v59 }
 0x263   :  { %1954 = vmatpush3.bf16.msra.mxu1 %v2102_v57  ;;  %1961 = vmatprep.mubr.msk.bf16.mxu1 %vm102_vm1, %v1356_v6 }
 0x264   :  { %1955 = vmatprep.subr.bf16.mxu1 %v2103_v61 }
 0x265   :  { %1944 = vmatpush3.bf16.msra.mxu0 %v2099_v59 }
 0x266   :  { %1945 = vmatprep.subr.bf16.mxu0 %v2100_v8 }
 0x267   :  { %1956 = vmatpush3.bf16.msra.mxu1 %v2103_v61 }
 0x268   :  { %1161 = vmatmul.mubr.bf16.gmra.mrb[20].mxu0 %v2587_v3  ;;  %1957 = vmatprep.subr.bf16.mxu1 %v2104_v62 }
 0x269   :  { %1946 = vmatpush3.bf16.msra.mxu0 %v2100_v8  ;;  %1949 = vmatprep.mubr.msk.bf16.mxu0 %vm102_vm1, %v1356_v6 }
 0x26a   :  { %1947 = vmatprep.subr.bf16.mxu0 %v2101_v21 }
 0x26b   :  { %1958 = vmatpush3.bf16.msra.mxu1 %v2104_v62 }
 0x26c   :  { %1959 = vmatprep.subr.bf16.mxu1 %v2105_v2 }
 0x26d   :  { %1948 = vmatpush3.bf16.msra.mxu0 %v2101_v21 }
 0x26f   :  { %1960 = vmatpush3.bf16.msra.mxu1 %v2105_v2 }
 0x270   :  { %1950 = vmatmul.mubr.msk.bf16.vlgmr.msra.gmra.mrb[24].mxu0 %vm102_vm1, %v2256_v9 }
 0x272   :  { %1962 = vmatmul.mubr.msk.bf16.vlgmr.msra.gmra.mrb[16].mxu1 %vm102_vm1, %v2256_v9 }
 0x313   :  { %v1829_v22 = vpop.f32.mrb[8].mxu0 }
 0x314   :  { %v1830_v15 = vpop.f32.mrb[9].mxu0 }
 0x315   :  { %v1831_v20 = vadd.f32 %v1830_v15, %v1829_v22  ;;  %v1919_v37 = vpop.f32.mrb[8].mxu1  ;;  %v1832_v39 = vpop.f32.mrb[10].mxu0 }
 0x316   :  { %v928_v12 = vpop.f32.mrb[9].mxu1  ;;  %v1833_v23 = vpop.f32.mrb[11].mxu0 }
 0x317   :  { %v929_v25 = vadd.f32 %v1831_v20, %v928_v12  ;;  %v1834_v24 = vadd.f32 %v1833_v23, %v1832_v39  ;;  %v1920_v27 = vpop.f32.mrb[10].mxu1 }
 0x318   :  { %v931_v29 = vpop.f32.mrb[11].mxu1 }
 0x319   :  { %v943_v30 = vmul.f32 %v929_v25, %v2399_v1  ;;  %v932_v31 = vadd.f32 %v1834_v24, %v931_v29 }
 0x31b   :  { %v1835_v14 = vpop.f32.mrb[12].mxu0  ;;  %1219 = vperm.xlu0 %1999, %v943_v30   ;;  %950 = vperm.xlu1 %1998, %v943_v30   ;;  %v944_v34 = vmul.f32 %v932_v31, %v2409_v11 }
 0x31c   :  { %v1836_v32 = vpop.f32.mrb[13].mxu0 }
 0x31d   :  { %v1837_v33 = vadd.f32 %v1836_v32, %v1835_v14  ;;  %v1838_v9 = vpop.f32.mrb[14].mxu0 }
 0x31e   :  { %v1839_v35 = vpop.f32.mrb[15].mxu0 }
 0x31f   :  { %v937_v26 = vadd.f32 %v1919_v37, %v1837_v33  ;;  %v1840_v36 = vadd.f32 %v1839_v35, %v1838_v9  ;;  %2002 = vset.pattern.permute.xlu0 %v2138_v7  ;;  %2000 = vset.pattern.permute.xlu1 %v2140_v0 }
 0x320   :  { %955 = vperm.xlu0 %2002, %v944_v34   ;;  %1247 = vperm.xlu1 %2000, %v943_v30  }
 0x321   :  { %v940_v3 = vadd.f32 %v1920_v27, %v1840_v36  ;;  %v945_v13 = vmul.f32 %v937_v26, %v2415_v16 }
 0x323   :  { %v946_v38 = vmul.f32 %v940_v3, %v2429_v28 }
 0x324   :  { %2004 = vset.pattern.permute.xlu0 %v2140_v0  ;;  %2001 = vset.pattern.permute.xlu1 %v2141_v17 }
 0x325   :  { %1251 = vperm.xlu0 %2004, %v944_v34   ;;  %1275 = vperm.xlu1 %2001, %v943_v30  }
 0x329   :  { %2005 = vset.pattern.permute.xlu0 %v2141_v17  ;;  %2003 = vset.pattern.permute.xlu1 %v2142_v18 }
 0x32a   :  { %1279 = vperm.xlu0 %2005, %v944_v34   ;;  %1223 = vperm.xlu1 %2003, %v944_v34  }
 0x32e   :  { %2007 = vset.pattern.permute.xlu0 %v2142_v18  ;;  %2006 = vset.pattern.permute.xlu1 %v2138_v7 }
 0x32f   :  { %1227 = vperm.xlu0 %2007, %v945_v13   ;;  %960 = vperm.xlu1 %2006, %v945_v13  }
 0x333   :  { %v1867_v40 = vpop.f32.mrb[16].mxu0  ;;  %1231 = vperm.xlu0 %2007, %v946_v38   ;;  %2008 = vset.pattern.permute.xlu1 %v2140_v0 }
 0x334   :  { %v1868_v41 = vpop.f32.mrb[17].mxu0  ;;  %1255 = vperm.xlu1 %2008, %v945_v13  }
 0x335   :  { %v2703_v42 = vadd.f32 %v1868_v41, %v1867_v40  ;;  %v2705_v55 = vpop.f32.mrb[12].mxu1  ;;  %v1870_v43 = vpop.f32.mrb[18].mxu0 }
 0x336   :  { %v2707_v44 = vpop.f32.mrb[13].mxu1  ;;  %v1871_v45 = vpop.f32.mrb[19].mxu0 }
 0x337   :  { %v2709_v46 = vadd.f32 %v1871_v45, %v1870_v43  ;;  %v2711_v47 = vpop.f32.mrb[14].mxu1  ;;  %2011 = vset.pattern.permute.xlu0 %v2140_v0 }
 0x338   :  { %v2714_v48 = vpop.f32.mrb[15].mxu1  ;;  %1259 = vperm.xlu0 %2011, %v946_v38   ;;  %2009 = vset.pattern.permute.xlu1 %v2141_v17 }
 0x339   :  { %1283 = vperm.xlu1 %2009, %v945_v13  }
 0x33b   :  { %v1873_v49 = vpop.f32.mrb[20].mxu0 }
 0x33c   :  { %v1874_v50 = vpop.f32.mrb[21].mxu0  ;;  %2015 = vset.pattern.permute.xlu0 %v2142_v18 }
 0x33d   :  { %v2718_v10 = vadd.f32 %v1874_v50, %v1873_v49  ;;  %v1876_v51 = vpop.f32.mrb[22].mxu0  ;;  %2010 = vset.pattern.permute.xlu1 %v2138_v7 }
 0x33e   :  { %v1877_v52 = vpop.f32.mrb[23].mxu0  ;;  %965 = vperm.xlu1 %2010, %v946_v38  }
 0x33f   :  { %v2721_v53 = vadd.f32 %v1877_v52, %v1876_v51 }
 0x343   :  { %v1951_v54 = vpop.f32.mrb[24].mxu0 }
 0x344   :  { %v1455_v56 = vmul.f32 %v1951_v54, %v2415_v16  ;;  %v1438_v57 = vpop.f32.mrb[25].mxu0 }
 0x345   :  { %v1453_v59 = vmul.f32 %v1438_v57, %v2399_v1  ;;  %v1952_v61 = vpop.f32.mrb[26].mxu0  ;;  %v2725_v5 = vpop.f32.mrb[16].mxu1 }
 0x346   :  { %v1441_v63 = vpop.f32.mrb[27].mxu0  ;;  %1470 = vperm.xlu1 %2010, %v1455_v56   ;;  %v2734_v16 = vpop.f32.mrb[17].mxu1  ;;  %v1456_v6 = vmul.f32 %v1952_v61, %v2429_v28 }
 0x347   :  { %1560 = vperm.xlu0 %2015, %v1453_v59   ;;  %v1454_v1 = vmul.f32 %v1441_v63, %v2409_v11  ;;  %v2737_v8 = vpop.f32.mrb[18].mxu1 }
 0x348   :  { %v2739_v62 = vpop.f32.mrb[19].mxu1 }
 0x34a   :  { %2012 = vset.pattern.permute.xlu1 %v2142_v18 }
 0x34b   :  { %2016 = vset.pattern.permute.xlu0 %v2140_v0  ;;  %1568 = vperm.xlu1 %2012, %v1455_v56  }
 0x34c   :  { %1588 = vperm.xlu0 %2016, %v1453_v59  }
 0x34f   :  { %2013 = vset.pattern.permute.xlu1 %v2140_v0 }
 0x350   :  { %2017 = vset.pattern.permute.xlu0 %v2141_v17  ;;  %1596 = vperm.xlu1 %2013, %v1455_v56  }
 0x351   :  { %1616 = vperm.xlu0 %2017, %v1453_v59  }
 0x354   :  { %2014 = vset.pattern.permute.xlu1 %v2138_v7 }
 0x355   :  { %2020 = vset.pattern.permute.xlu0 %v2138_v7  ;;  %1460 = vperm.xlu1 %2014, %v1453_v59   ;;  %v947_v7 = vld [vmem:[%s2859_s9] sm:$0xf] }
 0x356   :  { %1465 = vperm.xlu0 %2020, %v1454_v1   ;;  %v971_v11 = vrot.slane %v947_v7, %v2525_v58  ;;  %v1237_v2 = vrot.slane %v947_v7, %v2531_v60  ;;  %v1293_v25 = vrot.slane %v947_v7, %v2541_v19 }
 0x359   :  { %1475 = vperm.xlu1 %2014, %v1456_v6  }
 0x35a   :  { %2021 = vset.pattern.permute.xlu0 %v2141_v17 }
 0x35b   :  { %1624 = vperm.xlu0 %2021, %v1455_v56  }
 0x35d   :  { %2018 = vset.pattern.permute.xlu1 %v2142_v18 }
 0x35e   :  { %1572 = vperm.xlu1 %2018, %v1456_v6  }
 0x362   :  { %2019 = vset.pattern.permute.xlu1 %v2140_v0 }
 0x363   :  { %1600 = vperm.xlu1 %2019, %v1456_v6  }
 0x367   :  { %2022 = vset.pattern.permute.xlu1 %v2141_v17 }
 0x368   :  { %1287 = vperm.xlu1 %2022, %v946_v38  }
 0x36c   :  { %2023 = vset.pattern.permute.xlu1 %v2142_v18  ;;  %v2754_v18 = vrot.slane %v947_v7, %v2536_v4 }
 0x36d   :  { %1564 = vperm.xlu1 %2023, %v1454_v1  }
 0x371   :  { %2024 = vset.pattern.permute.xlu1 %v2140_v0 }
 0x372   :  { %1592 = vperm.xlu1 %2024, %v1454_v1  }
 0x376   :  { %2025 = vset.pattern.permute.xlu1 %v2141_v17 }
 0x377   :  { %1620 = vperm.xlu1 %2025, %v1454_v1  }
 0x37b   :  { %1628 = vperm.xlu1 %2025, %v1456_v6  }
 0x39a   :  { %v1220_v28 = vpop.permute.xlu0 %1219  ;;  %v951_v21 = vpop.permute.xlu1 %950 }
 0x39b   :  { %v972_v22 = vmul.f32 %v971_v11, %v951_v21  ;;  %v1238_v15 = vmul.f32 %v1237_v2, %v1220_v28 }
 0x39d   :  { %v1155_v0 = vadd.f32 %v2703_v42, %v972_v22 }
 0x39f   :  { %v1204_v17 = vadd.f32 %v2707_v44, %v1155_v0  ;;  %v956_v20 = vpop.permute.xlu0 %955  ;;  %v1248_v37 = vpop.permute.xlu1 %1247 }
 0x3a0   :  { %v973_v39 = vmul.f32 %v971_v11, %v956_v20  ;;  %v1266_v12 = vmul.f32 %v2754_v18, %v1248_v37 }
 0x3a1   :  { %v1242_v23 = vadd.f32 %v1238_v15, %v1204_v17 }
 0x3a2   :  { %v1158_v24 = vadd.f32 %v2709_v46, %v973_v39 }
 0x3a3   :  { %v1270_v27 = vadd.f32 %v1266_v12, %v1242_v23  ;;  %v1457_v23 = vld [vmem:[%s2864_s14] sm:$0xf] }
 0x3a4   :  { %v1252_v29 = vpop.permute.xlu0 %1251  ;;  %v1276_v30 = vpop.permute.xlu1 %1275  ;;  %v1207_v31 = vadd.f32 %v2714_v48, %v1158_v24 }
 0x3a5   :  { %v1294_v14 = vmul.f32 %v1293_v25, %v1276_v30  ;;  %v1267_v35 = vmul.f32 %v2754_v18, %v1252_v29 }
 0x3a7   :  { %v2762_v32 = vadd.f32 %v1294_v14, %v1270_v27  ;;  %v1578_v14 = vrot.slane %v1457_v23, %v2531_v60 }
 0x3a9   :  { %v1224_v33 = vpop.permute.xlu1 %1223  ;;  %v1280_v9 = vpop.permute.xlu0 %1279  ;;  %v1312_v43 = vmul.f32 %v2762_v32, %v2762_v32 }
 0x3aa   :  { %v1239_v34 = vmul.f32 %v1237_v2, %v1224_v33  ;;  %v1295_v36 = vmul.f32 %v1293_v25, %v1280_v9 }
 0x3ac   :  { %v1243_v26 = vadd.f32 %v1239_v34, %v1207_v31 }
 0x3ae   :  { %v1271_v3 = vadd.f32 %v1267_v35, %v1243_v26  ;;  %v961_v13 = vpop.permute.xlu1 %960  ;;  %v1228_v41 = vpop.permute.xlu0 %1227 }
 0x3af   :  { %v974_v38 = vmul.f32 %v971_v11, %v961_v13  ;;  %v1240_v46 = vmul.f32 %v1237_v2, %v1228_v41 }
 0x3b0   :  { %v2765_v40 = vadd.f32 %v1295_v36, %v1271_v3 }
 0x3b1   :  { %v1163_v42 = vadd.f32 %v2718_v10, %v974_v38 }
 0x3b2   :  { %v1313_v44 = vmul.f32 %v2765_v40, %v2765_v40  ;;  %v1302_v45 = vadd.f32 %v2765_v40, %v2762_v32  ;;  %v1232_v0 = vpop.permute.xlu0 %1231 }
 0x3b3   :  { %v1212_v48 = vadd.f32 %v2705_v55, %v1163_v42  ;;  %v1256_v49 = vpop.permute.xlu1 %1255 }
 0x3b4   :  { %v1316_v50 = vadd.f32 %v1313_v44, %v1312_v43  ;;  %v1268_v52 = vmul.f32 %v2754_v18, %v1256_v49 }
 0x3b5   :  { %v1244_v51 = vadd.f32 %v1240_v46, %v1212_v48 }
 0x3b7   :  { %v1272_v56 = vadd.f32 %v1268_v52, %v1244_v51  ;;  %v1260_v17 = vpop.permute.xlu0 %1259 }
 0x3b8   :  { %v1284_v54 = vpop.permute.xlu1 %1283 }
 0x3b9   :  { %v1296_v10 = vmul.f32 %v1293_v25, %v1284_v54 }
 0x3bb   :  { %v2776_v57 = vadd.f32 %v1296_v10, %v1272_v56 }
 0x3bd   :  { %v1303_v59 = vadd.f32 %v1302_v45, %v2776_v57  ;;  %v1314_v61 = vmul.f32 %v2776_v57, %v2776_v57  ;;  %v966_v63 = vpop.permute.xlu1 %965 }
 0x3be   :  { %v975_v1 = vmul.f32 %v971_v11, %v966_v63  ;;  %v1241_v11 = vmul.f32 %v1237_v2, %v1232_v0  ;;  %v1606_v2 = vrot.slane %v1457_v23, %v2536_v4 }
 0x3bf   :  { %v1317_v6 = vadd.f32 %v1316_v50, %v1314_v61 }
 0x3c0   :  { %v1166_v55 = vadd.f32 %v2721_v53, %v975_v1  ;;  %v1481_v53 = vrot.slane %v1457_v23, %v2525_v58 }
 0x3c2   :  { %v1215_v7 = vadd.f32 %v2711_v47, %v1166_v55  ;;  %v1269_v47 = vmul.f32 %v2754_v18, %v1260_v17 }
 0x3c4   :  { %v1245_v27 = vadd.f32 %v1241_v11, %v1215_v7 }
 0x3c5   :  { %v1471_v28 = vpop.permute.xlu1 %1470 }
 0x3c6   :  { %v1561_v37 = vpop.permute.xlu0 %1560  ;;  %v1273_v33 = vadd.f32 %v1269_v47, %v1245_v27  ;;  %v1484_v38 = vmul.f32 %v1481_v53, %v1471_v28 }
 0x3c7   :  { %v1579_v26 = vmul.f32 %v1578_v14, %v1561_v37 }
 0x3c8   :  { %v1553_v4 = vadd.f32 %v2725_v5, %v1484_v38 }
 0x3ca   :  { %v1569_v21 = vpop.permute.xlu1 %1568 }
 0x3cb   :  { %v1589_v12 = vpop.permute.xlu0 %1588 }
 0x3cc   :  { %v1607_v44 = vmul.f32 %v1606_v2, %v1589_v12 }
 0x3cf   :  { %v1597_v22 = vpop.permute.xlu1 %1596 }
 0x3d0   :  { %v1617_v29 = vpop.permute.xlu0 %1616  ;;  %v1609_v50 = vmul.f32 %v1606_v2, %v1597_v22 }
 0x3d4   :  { %v1461_v15 = vpop.permute.xlu1 %1460 }
 0x3d5   :  { %v1482_v30 = vmul.f32 %v1481_v53, %v1461_v15  ;;  %v1466_v36 = vpop.permute.xlu0 %1465 }
 0x3d6   :  { %v1483_v43 = vmul.f32 %v1481_v53, %v1466_v36 }
 0x3d7   :  { %v1545_v34 = vadd.f32 %v2734_v16, %v1482_v30  ;;  %v1581_v16 = vmul.f32 %v1578_v14, %v1569_v21 }
 0x3d8   :  { %v1476_v20 = vpop.permute.xlu1 %1475  ;;  %v1548_v10 = vadd.f32 %v2739_v62, %v1483_v43 }
 0x3d9   :  { %v1583_v41 = vadd.f32 %v1579_v26, %v1545_v34  ;;  %v1585_v63 = vadd.f32 %v1581_v16, %v1553_v4 }
 0x3da   :  { %v1625_v52 = vpop.permute.xlu0 %1624 }
 0x3db   :  { %v1611_v51 = vadd.f32 %v1607_v44, %v1583_v41  ;;  %v1613_v21 = vadd.f32 %v1609_v50, %v1585_v63 }
 0x3dd   :  { %v1573_v39 = vpop.permute.xlu1 %1572 }
 0x3de   :  { %v1582_v7 = vmul.f32 %v1578_v14, %v1573_v39 }
 0x3e2   :  { %v1601_v24 = vpop.permute.xlu1 %1600 }
 0x3e3   :  { %v1610_v37 = vmul.f32 %v1606_v2, %v1601_v24 }
 0x3e7   :  { %v1288_v31 = vpop.permute.xlu1 %1287 }
 0x3e8   :  { %v1297_v9 = vmul.f32 %v1293_v25, %v1288_v31  ;;  %v1634_v25 = vrot.slane %v1457_v23, %v2541_v19 }
 0x3ea   :  { %v2790_v35 = vadd.f32 %v1297_v9, %v1273_v33  ;;  %v1635_v19 = vmul.f32 %v1634_v25, %v1617_v29  ;;  %v1637_v55 = vmul.f32 %v1634_v25, %v1625_v52  ;;  %v1329_v52 = vld [vmem:[%s2860_s10] sm:$0x1] }
 0x3ec   :  { %v1304_v3 = vadd.f32 %v1303_v59, %v2790_v35  ;;  %v1315_v18 = vmul.f32 %v2790_v35, %v2790_v35  ;;  %v1565_v13 = vpop.permute.xlu1 %1564  ;;  %v1485_v59 = vmul.f32 %v1481_v53, %v1476_v20  ;;  %v2799_v5 = vadd.f32 %v1635_v19, %v1611_v51  ;;  %v1333_v19 = vld [vmem:[%s2861_s11] sm:$0x1] }
 0x3ed   :  { %v1580_v48 = vmul.f32 %v1578_v14, %v1565_v13  ;;  %v2802_v11 = vadd.f32 %v1637_v55, %v1613_v21 }
 0x3ee   :  { %v1305_v42 = vrot.slane %v1304_v3, 4  ;;  %v1318_v60 = vadd.f32 %v1317_v6, %v1315_v18  ;;  %v1556_v17 = vadd.f32 %v2737_v8, %v1485_v59  ;;  %v1653_v29 = vmul.f32 %v2799_v5, %v2799_v5 }
 0x3ef   :  { %v1584_v28 = vadd.f32 %v1580_v48, %v1548_v10  ;;  %v1655_v34 = vmul.f32 %v2802_v11, %v2802_v11 }
 0x3f0   :  { %v1306_v45 = vadd.f32 %v1305_v42, %v1304_v3  ;;  %v1319_v46 = vrot.slane %v1318_v60, 4  ;;  %v1586_v53 = vadd.f32 %v1582_v7, %v1556_v17 }
 0x3f1   :  { %v1593_v49 = vpop.permute.xlu1 %1592 }
 0x3f2   :  { %v1307_v54 = vrot.slane %v1306_v45, 2  ;;  %v1320_v56 = vadd.f32 %v1319_v46, %v1318_v60  ;;  %v1608_v61 = vmul.f32 %v1606_v2, %v1593_v49  ;;  %v1614_v31 = vadd.f32 %v1610_v37, %v1586_v53  ;;  %v1670_v53 = vld [vmem:[%s2865_s15] sm:$0x1]  ;;  %s2143_s15 = smov [#allocation2]  }
 0x3f3   :  { %s1714_s30 = sshll.u32 %s2143_s15, 4  ;;  %s1715_s30 = int_to_ptr.vmem [resolvable:$true] %s1714_s30 }
 0x3f4   :  { %v1308_v1 = vadd.f32 %v1307_v54, %v1306_v45  ;;  %v1321_v6 = vrot.slane %v1320_v56, 2  ;;  %v1612_v12 = vadd.f32 %v1608_v61, %v1584_v28  ;;  %p2119_p1 = scmp.lt.s32.totalorder %s1715_s30, %s1715_s30 }
 0x3f6   :  { %v1309_v0 = vrot.slane %v1308_v1, 1  ;;  %v1322_v22 = vadd.f32 %v1321_v6, %v1320_v56  ;;  %v1621_v15 = vpop.permute.xlu1 %1620 }
 0x3f7   :  { %v1636_v62 = vmul.f32 %v1634_v25, %v1621_v15 }
 0x3f8   :  { %v1310_v20 = vadd.f32 %v1309_v0, %v1308_v1  ;;  %v1323_v23 = vrot.slane %v1322_v22, 1 }
 0x3f9   :  { %v2804_v27 = vadd.f32 %v1636_v62, %v1612_v12 }
 0x3fa   :  { %v1311_v39 = vmul.f32 0.03125, %v1310_v20  ;;  %v1324_v47 = vadd.f32 %v1323_v23, %v1322_v22  ;;  %v1629_v30 = vpop.permute.xlu1 %1628 }
 0x3fb   :  { %v1643_v8 = vadd.f32 %v2804_v27, %v2799_v5  ;;  %v1654_v24 = vmul.f32 %v2804_v27, %v2804_v27  ;;  %v1638_v14 = vmul.f32 %v1634_v25, %v1629_v30 }
 0x3fc   :  { %v1325_v33 = vmul.f32 0.03125, %v1324_v47  ;;  %v1326_v9 = vmul.f32 %v1311_v39, %v1311_v39 }
 0x3fd   :  { %v1657_v26 = vadd.f32 %v1654_v24, %v1653_v29  ;;  %v1644_v2 = vadd.f32 %v1643_v8, %v2802_v11  ;;  %v1642_v36 = vadd.f32 %v1638_v14, %v1614_v31 }
 0x3fe   :  { %v1327_v3 = vsub.f32 %v1325_v33, %v1326_v9 }
 0x3ff   :  { %v1658_v18 = vadd.f32 %v1657_v26, %v1655_v34  ;;  %v1645_v13 = vadd.f32 %v1644_v2, %v1642_v36  ;;  %v1656_v38 = vmul.f32 %v1642_v36, %v1642_v36 }
 0x400   :  { %v1328_v41 = vmax.f32 %v1327_v3, 0.0 }
 0x401   :  { %v1646_v42 = vrot.slane %v1645_v13, 4  ;;  %v1659_v60 = vadd.f32 %v1658_v18, %v1656_v38 }
 0x402   :  { %v1330_v43 = vadd.f32 1e-05, %v1328_v41 }
 0x403   :  { %v1647_v16 = vadd.f32 %v1646_v42, %v1645_v13  ;;  %v1660_v44 = vrot.slane %v1659_v60, 4 }
 0x404   :  { %2108 = vrsqrt.f32 %v1330_v43 }
 0x405   :  { %v1648_v25 = vrot.slane %v1647_v16, 2  ;;  %v1661_v45 = vadd.f32 %v1660_v44, %v1659_v60 }
 0x407   :  { %v1649_v46 = vadd.f32 %v1648_v25, %v1647_v16  ;;  %v1662_v4 = vrot.slane %v1661_v45, 2 }
 0x409   :  { %v1650_v48 = vrot.slane %v1649_v46, 1  ;;  %v1663_v49 = vadd.f32 %v1662_v4, %v1661_v45 }
 0x40b   :  { %v1651_v50 = vadd.f32 %v1650_v48, %v1649_v46  ;;  %v1664_v51 = vrot.slane %v1663_v49, 1 }
 0x40d   :  { %v1652_v54 = vmul.f32 0.03125, %v1651_v50  ;;  %v1665_v56 = vadd.f32 %v1664_v51, %v1663_v49 }
 0x40e   :  { %v2109_v10 = vpop.eup %2108 }
 0x40f   :  { %v1332_v59 = vmul.f32 %v2109_v10, %v1329_v52  ;;  %v1666_v61 = vmul.f32 0.03125, %v1665_v56  ;;  %v1667_v63 = vmul.f32 %v1652_v54, %v1652_v54 }
 0x411   :  { %v1334_v1 = vmul.f32 %v1332_v59, %v1311_v39  ;;  %v1340_v6 = vrot.slane %v1332_v59, %v2525_v58  ;;  %v1668_v55 = vsub.f32 %v1666_v61, %v1667_v63 }
 0x413   :  { %v1335_v7 = vsub.f32 %v1333_v19, %v1334_v1  ;;  %v1345_v28 = vmul.f32 %v1340_v6, %v2790_v35  ;;  %v1669_v21 = vmax.f32 %v1668_v55, 0.0  ;;  %v1342_v0 = vmul.f32 %v1340_v6, %v2762_v32  ;;  %v1674_v32 = vld [vmem:[%s2866_s16] sm:$0x1]  ;;  %s2114_s16 = scalar_lea.vmem %s1715_s30, 512 }
 0x414   :  { %v1343_v22 = vmul.f32 %v1340_v6, %v2765_v40  ;;  %v1344_v15 = vmul.f32 %v1340_v6, %v2776_v57  ;;  %p2115_p0 = scmp.ne.s32.totalorder %s1715_s30, %s2114_s16  ;;  %p2120_p2 = scmp.lt.s32.totalorder %s2114_s16, %s2114_s16 }
 0x415   :  { %v1350_v17 = vrot.slane %v1335_v7, %v2525_v58  ;;  %v1671_v37 = vadd.f32 1e-05, %v1669_v21 }
 0x416   :  { %p2121_p3 = por %p2120_p2, %p2119_p1 }
 0x417   :  { %v1355_v12 = vadd.f32 %v1350_v17, %v1345_v28  ;;  %2110 = vrsqrt.f32 %v1671_v37  ;;  %v1352_v62 = vadd.f32 %v1350_v17, %v1342_v0  ;;  %v1353_v20 = vadd.f32 %v1350_v17, %v1343_v22 }
 0x418   :  { %v1354_v23 = vadd.f32 %v1350_v17, %v1344_v15  ;;  %p2122_p4 = pnand %p2121_p3, %p2115_p0 }
 0x421   :  { %v2111_v35 = vpop.eup %2110 }
 0x422   :  { %v1673_v39 = vmul.f32 %v2111_v35, %v1670_v53 }
 0x424   :  { %v1675_v40 = vmul.f32 %v1673_v39, %v1652_v54  ;;  %v1681_v57 = vrot.slane %v1673_v39, %v2525_v58 }
 0x426   :  { %v1676_v47 = vsub.f32 %v1674_v32, %v1675_v40  ;;  %v1686_v29 = vmul.f32 %v1681_v57, %v1642_v36  ;;  %v1683_v30 = vmul.f32 %v1681_v57, %v2799_v5  ;;  %v1684_v31 = vmul.f32 %v1681_v57, %v2804_v27 }
 0x427   :  { %v1685_v8 = vmul.f32 %v1681_v57, %v2802_v11 }
 0x428   :  { %v1691_v24 = vrot.slane %v1676_v47, %v2525_v58 }
 0x42a   :  { %v1696_v14 = vadd.f32 %v1691_v24, %v1686_v29  ;;  %v1693_v33 = vadd.f32 %v1691_v24, %v1683_v30  ;;  %v1694_v9 = vadd.f32 %v1691_v24, %v1684_v31  ;;  %v1695_v34 = vadd.f32 %v1691_v24, %v1685_v8 }
 0x42c   :  { %v1700_v26 = vadd.f32 %v1696_v14, %v1355_v12  ;;  %v1697_v2 = vadd.f32 %v1693_v33, %v1352_v62  ;;  %v1698_v3 = vadd.f32 %v1694_v9, %v1353_v20  ;;  %v1699_v18 = vadd.f32 %v1695_v34, %v1354_v23 }
 0x42e   :  { %v1704_v13 = vmax.f32 %v1700_v26, 0.0  ;;  %v1701_v36 = vmax.f32 %v1697_v2, 0.0  ;;  %v1702_v38 = vmax.f32 %v1698_v3, 0.0  ;;  %v1703_v5 = vmax.f32 %v1699_v18, 0.0 }
 0x430   :  { %1708 = vst [vmem:[#allocation2 + $0x18] sm:$0xff] %v1704_v13  ;;  %1705 = vst [vmem:[#allocation2] sm:$0xff] %v1701_v36 }
 0x431   :  { %1706 = vst [vmem:[#allocation2 + $0x8] sm:$0xff] %v1702_v38  ;;  %1707 = vst [vmem:[#allocation2 + $0x10] sm:$0xff] %v1703_v5 }
 0x432   :  { %2125 = shalt.err (!%p2122_p4)
}
 0x433   :  { %s2126_s19 = scalar_lea.hbm %s2867_s17, 512 }
 0x434   :  { %p2127_p5 = scmp.ne.s32.totalorder %s2867_s17, %s2126_s19  ;;  %p2130_p6 = scmp.lt.u32.totalorder %s2126_s19, %s2867_s17 }
 0x436   :  { %p2132_p7 = pnand %p2130_p6, %p2127_p5 }
 0x438   :  { %2135 = shalt.err (!%p2132_p7)
}
 0x439   :  { %s2144_s22 = smov 128   ;;  %s2145_s4 = smov 8  }
 0x43a   :  { %1720 = dma.vmem_to_hbm [thread:$0]  %s1715_s30, 512, %s2867_s17, [#allocation3], %s2144_s22, %s2144_s22, %s2145_s4  }
 0x43b   :  { %2136 = dma.done.wait [#allocation3], 512  }
 0x43c   :  { %2137 = vsyncadd [#allocation3], 4294966784 }
 0x43d   :  { %1724 = vsyncpa [#allocation3], 1 }

</bundles_post_ra>
